<compile_context>
chip_gen: v5e
topology: v5e:2x2
jax: 0.10.0
libtpu: 0.0.40
codegen_flags: <defaults>
</compile_context>

<pallas_src>
import functools
import math

import jax
import jax.numpy as jnp
import numpy as np
from jax.experimental import pallas as pl
from jax.experimental.pallas import tpu as pltpu


_N_MAMBA_PARAMS = 13


# --------------------------- fused Encoder_MM kernel -------------------------

def _encoder_mm_kernel(x_ref, *refs, seq, d_inner, d_state, d_conv,
                       n_blocks, eps):
    o_ref = refs[-1]
    param_refs = refs[:-1]

    def sigmoid(v):
        # exp on the EUP + approx reciprocal (vrcp) -> divide-free.
        return pl.reciprocal(1.0 + jnp.exp(-v), approx=True)

    def silu(v):
        return v * sigmoid(v)

    def softplus(v):
        return jnp.maximum(v, 0.0) + jnp.log(1.0 + jnp.exp(-jnp.abs(v)))

    def dotT(a, w):
        # a @ w.T without materializing a transpose.
        return jax.lax.dot_general(a, w, (((1,), (1,)), ((), ())),
                                   preferred_element_type=jnp.float32)

    def shift_down(v, s, fill):
        # Causal time shift: row t -> value of row t-s; top s rows = `fill`.
        if s == 0:
            return v
        pad = jnp.full((s, v.shape[1]), fill, dtype=v.dtype)
        return jnp.concatenate([pad, v[: v.shape[0] - s]], axis=0)

    def mamba_block(xin, prefs):
        (w_in, w_convT, b_conv, w_bc, w_delta, b_dt, a_neg, d_par, w_out,
         g, be, mu, var) = [r[...] for r in prefs]

        # in_proj (bias=False): (L, 2*d_inner); conv path / gate path.
        xz = dotT(xin, w_in)
        xp = xz[:, :d_inner]
        zg = xz[:, d_inner:]

        # Depthwise causal Conv1d(kernel=d_conv, padding=d_conv-1)[..., :L]:
        # d_conv shifted slices + per-tap FMAs (VPU only, no shift matrix).
        conv = b_conv + w_convT[d_conv - 1:d_conv, :] * xp
        for s in range(1, d_conv):
            conv = conv + (w_convT[d_conv - 1 - s:d_conv - s, :]
                           * shift_down(xp, s, 0.0))
        xc = silu(conv)                                 # (L, d_inner)

        # x_proj -> (B, C); delta projection folded into W_delta on the host.
        x_bc = dotT(xc, w_bc)                           # (L, 2*d_state)
        Bm = x_bc[:, :d_state]
        Cm = x_bc[:, d_state:]
        delta = softplus(dotT(xc, w_delta) + b_dt)      # (L, d_inner)
        u = delta * xc

        # Selective scan.  All d_state recurrences packed along the lane axis:
        # tiles are (L, d_state*d_inner).  The linear recurrence
        # h_t = dA_t * h_{t-1} + dBu_t (h_{-1}=0) is solved with a
        # Hillis-Steele parallel prefix: ceil(log2 L) vectorized steps instead
        # of a length-L serial FMA chain.
        dA = jnp.exp(jnp.concatenate(
            [delta * a_neg[s:s + 1, :] for s in range(d_state)], axis=1))
        dBu = jnp.concatenate(
            [Bm[:, s:s + 1] * u for s in range(d_state)], axis=1)

        a, b = dA, dBu
        d = 1
        while d < seq:
            b = a * shift_down(b, d, 0.0) + b
            if 2 * d < seq:                 # last step does not need `a`
                a = a * shift_down(a, d, 1.0)
            d *= 2
        hs = b                              # (L, d_state*d_inner): h_t per (s,e)

        # Readout: y = sum_s C[:, s] * h_s + D * x_conv.
        y = d_par * xc
        for s in range(d_state):
            y = y + Cm[:, s:s + 1] * hs[:, s * d_inner:(s + 1) * d_inner]

        y = y * silu(zg)                    # gate
        out = dotT(y, w_out)                # out_proj (bias=False)

        res = xin + out                     # residual (dropout -> identity)
        # BatchNorm1d(d_model), eval mode (per-channel affine, running stats).
        return (res - mu) * jax.lax.rsqrt(var + eps) * g + be

    cur = x_ref[...]                        # (L, d_model)
    for blk in range(n_blocks):
        prefs = param_refs[blk * _N_MAMBA_PARAMS:(blk + 1) * _N_MAMBA_PARAMS]
        cur = mamba_block(cur, prefs)
    o_ref[...] = cur


# --------------------------------- wrapper ------------------------------------

def _prep_block_params(p, dt_rank):
    """Host-side parameter transforms (done once per set of weights)."""
    w_xproj = p["w_xproj"]
    # Fold the rank-dt_rank delta projection into a single (d_inner, d_inner)
    # weight: delta_pre = xc @ (w_dt @ w_xproj[:dt_rank]).T + b_dt.
    w_delta = jnp.dot(p["w_dt"], w_xproj[:dt_rank, :],
                      preferred_element_type=jnp.float32)
    w_bc = w_xproj[dt_rank:, :]             # rows producing (B, C)
    a_neg = -jnp.exp(p["a_logT"])           # A (transposed): (d_state, d_inner)
    return [p["w_in"], p["w_convT"], p["b_conv"], w_bc, w_delta, p["b_dt"],
            a_neg, p["d_param"], p["w_out"],
            p["bn_gamma"], p["bn_beta"], p["bn_mean"], p["bn_var"]]


def encoder_mm_pallas(x, params_list, *, d_state, d_conv, dt_rank, eps=1e-5):
    B, L, D = x.shape
    d_inner = params_list[0]["w_in"].shape[0] // 2

    flat = []
    for p in params_list:
        flat += _prep_block_params(p, dt_rank)

    kernel = functools.partial(
        _encoder_mm_kernel, seq=L, d_inner=d_inner, d_state=d_state,
        d_conv=d_conv, n_blocks=len(params_list), eps=eps)

    x_spec = pl.BlockSpec((None, L, D), lambda b: (b, 0, 0))
    w_specs = [pl.BlockSpec(w.shape, lambda b: (0, 0)) for w in flat]

    return pl.pallas_call(
        kernel,
        out_shape=jax.ShapeDtypeStruct((B, L, D), jnp.float32),
        grid=(B,),
        in_specs=[x_spec] + w_specs,
        out_specs=pl.BlockSpec((None, L, D), lambda b: (b, 0, 0)),
        compiler_params=pltpu.CompilerParams(
            dimension_semantics=("parallel",)),
    )(x, *flat)


# ------------------------------ parameter init --------------------------------

def _nrm(key, shape, scl):
    return (scl * jax.random.normal(key, shape)).astype(jnp.float32)


def init_mamba_params(key, d_model, d_state, d_conv, expand):
    d_inner = expand * d_model
    ks = jax.random.split(key, 11)
    dt = jnp.exp(jax.random.uniform(ks[5], (1, d_inner))
                 * (math.log(0.1) - math.log(0.001)) + math.log(0.001))
    a_logT = (jnp.log(jnp.arange(1, d_state + 1, dtype=jnp.float32))[:, None]
              * jnp.ones((1, d_inner), jnp.float32))       # A_log, transposed
    dt_rank = math.ceil(d_model / 16)
    return dict(
        w_in=_nrm(ks[0], (2 * d_inner, d_model), d_model ** -0.5),
        w_convT=_nrm(ks[1], (d_conv, d_inner), 0.3),        # depthwise, transposed
        b_conv=_nrm(ks[2], (1, d_inner), 0.05),
        w_xproj=_nrm(ks[3], (dt_rank + 2 * d_state, d_inner), d_inner ** -0.5),
        w_dt=_nrm(ks[4], (d_inner, dt_rank), dt_rank ** -0.5),
        b_dt=jnp.log(jnp.expm1(dt)).astype(jnp.float32),    # inverse-softplus init
        a_logT=a_logT,
        d_param=jnp.ones((1, d_inner), jnp.float32),
        w_out=_nrm(ks[6], (d_model, d_inner), d_inner ** -0.5),
        bn_gamma=(1.0 + 0.1 * jax.random.normal(ks[7], (1, d_model))).astype(jnp.float32),
        bn_beta=_nrm(ks[8], (1, d_model), 0.05),
        bn_mean=_nrm(ks[9], (1, d_model), 0.02),
        bn_var=(1.0 + 0.1 * jnp.abs(jax.random.normal(ks[10], (1, d_model)))).astype(jnp.float32),
    )


# ----------------------------- pure-JAX reference ------------------------------

def ref_mamba_block(x, p, *, d_state, d_conv, dt_rank, eps=1e-5):
    B, L, D = x.shape
    d_inner = p["w_in"].shape[0] // 2
    xz = jnp.einsum("bld,ed->ble", x, p["w_in"])
    xp, zg = xz[..., :d_inner], xz[..., d_inner:]
    pad = jnp.pad(xp, ((0, 0), (d_conv - 1, 0), (0, 0)))
    wc = p["w_convT"]
    conv = sum(pad[:, k:k + L, :] * wc[k] for k in range(d_conv)) + p["b_conv"]
    xc = conv * jax.nn.sigmoid(conv)
    x_dbl = jnp.einsum("ble,fe->blf", xc, p["w_xproj"])
    dt_r = x_dbl[..., :dt_rank]
    Bm = x_dbl[..., dt_rank:dt_rank + d_state]
    Cm = x_dbl[..., dt_rank + d_state:dt_rank + 2 * d_state]
    delta = jax.nn.softplus(jnp.einsum("blr,er->ble", dt_r, p["w_dt"]) + p["b_dt"])
    A = -jnp.exp(p["a_logT"]).T                             # (d_inner, d_state)

    def step(h, inp):
        d_t, B_t, C_t, x_t = inp
        h = (jnp.exp(d_t[..., None] * A) * h
             + d_t[..., None] * B_t[:, None, :] * x_t[..., None])
        y = jnp.einsum("bes,bs->be", h, C_t)
        return h, y

    h0 = jnp.zeros((B, d_inner, d_state), jnp.float32)
    inputs = (delta.transpose(1, 0, 2), Bm.transpose(1, 0, 2),
              Cm.transpose(1, 0, 2), xc.transpose(1, 0, 2))
    _, ys = jax.lax.scan(step, h0, inputs)
    y = ys.transpose(1, 0, 2) + p["d_param"] * xc
    y = y * (zg * jax.nn.sigmoid(zg))
    out = jnp.einsum("ble,de->bld", y, p["w_out"])
    res = x + out
    return ((res - p["bn_mean"]) / jnp.sqrt(p["bn_var"] + eps)
            * p["bn_gamma"] + p["bn_beta"])


def ref_encoder_mm(x, params_list, *, d_state, d_conv, dt_rank):
    for p in params_list:
        x = ref_mamba_block(x, p, d_state=d_state, d_conv=d_conv, dt_rank=dt_rank)
    return x


# ------------------------------------- main ------------------------------------

if __name__ == "__main__":
    jax.config.update("jax_default_matmul_precision", "highest")

    # Encoder_MM(..., n_layers=1) -> 2 Encoder_mamba blocks, Encoder_mamba
    # defaults: d_state=4, d_conv=4, expand=2.
    B, L, d_model = 2, 8, 32
    d_state, d_conv, expand = 4, 4, 2
    n_layers = 1
    dt_rank = math.ceil(d_model / 16)

    key = jax.random.PRNGKey(0)
    keys = jax.random.split(key, 2 * n_layers + 1)
    x = jax.random.normal(keys[0], (B, L, d_model), jnp.float32)
    params = [init_mamba_params(keys[i + 1], d_model, d_state, d_conv, expand)
              for i in range(2 * n_layers)]

    out = jax.block_until_ready(
        encoder_mm_pallas(x, params, d_state=d_state, d_conv=d_conv,
                          dt_rank=dt_rank))

    ref = jax.block_until_ready(
        ref_encoder_mm(x, params, d_state=d_state, d_conv=d_conv,
                       dt_rank=dt_rank))

    assert out.shape == (B, L, d_model)
    assert bool(jnp.all(jnp.isfinite(out)))
    max_err = float(jnp.max(jnp.abs(out - ref)))
    assert np.allclose(np.asarray(out), np.asarray(ref), atol=1e-2, rtol=1e-2), max_err
    print("KERNEL_OK")
</pallas_src>

<mosaic_0001>
module attributes {stable_mosaic.version = 11 : i64} {
  func.func @_encoder_mm_kernel(%arg0: i32, %arg1: memref<1x8x32xf32, #tpu.memory_space<vmem>>, %arg2: memref<128x32xf32, #tpu.memory_space<vmem>>, %arg3: memref<4x64xf32, #tpu.memory_space<vmem>>, %arg4: memref<1x64xf32, #tpu.memory_space<vmem>>, %arg5: memref<8x64xf32, #tpu.memory_space<vmem>>, %arg6: memref<64x64xf32, #tpu.memory_space<vmem>>, %arg7: memref<1x64xf32, #tpu.memory_space<vmem>>, %arg8: memref<4x64xf32, #tpu.memory_space<vmem>>, %arg9: memref<1x64xf32, #tpu.memory_space<vmem>>, %arg10: memref<32x64xf32, #tpu.memory_space<vmem>>, %arg11: memref<1x32xf32, #tpu.memory_space<vmem>>, %arg12: memref<1x32xf32, #tpu.memory_space<vmem>>, %arg13: memref<1x32xf32, #tpu.memory_space<vmem>>, %arg14: memref<1x32xf32, #tpu.memory_space<vmem>>, %arg15: memref<128x32xf32, #tpu.memory_space<vmem>>, %arg16: memref<4x64xf32, #tpu.memory_space<vmem>>, %arg17: memref<1x64xf32, #tpu.memory_space<vmem>>, %arg18: memref<8x64xf32, #tpu.memory_space<vmem>>, %arg19: memref<64x64xf32, #tpu.memory_space<vmem>>, %arg20: memref<1x64xf32, #tpu.memory_space<vmem>>, %arg21: memref<4x64xf32, #tpu.memory_space<vmem>>, %arg22: memref<1x64xf32, #tpu.memory_space<vmem>>, %arg23: memref<32x64xf32, #tpu.memory_space<vmem>>, %arg24: memref<1x32xf32, #tpu.memory_space<vmem>>, %arg25: memref<1x32xf32, #tpu.memory_space<vmem>>, %arg26: memref<1x32xf32, #tpu.memory_space<vmem>>, %arg27: memref<1x32xf32, #tpu.memory_space<vmem>>, %arg28: memref<1x8x32xf32, #tpu.memory_space<vmem>>) attributes {dimension_semantics = [#tpu.dimension_semantics<parallel>], iteration_bounds = array<i64: 2>, scalar_prefetch = 0 : i64, scratch_operands = 0 : i64, tpu.core_type = #tpu.core_type<tc>, window_params = [{transform_indices = @transform_0, window_bounds = array<i64: 1, 8, 32>}, {pipeline_mode = #tpu.pipeline_mode<synchronous>, transform_indices = @transform_1, window_bounds = array<i64: 128, 32>}, {pipeline_mode = #tpu.pipeline_mode<synchronous>, transform_indices = @transform_2, window_bounds = array<i64: 4, 64>}, {pipeline_mode = #tpu.pipeline_mode<synchronous>, transform_indices = @transform_3, window_bounds = array<i64: 1, 64>}, {pipeline_mode = #tpu.pipeline_mode<synchronous>, transform_indices = @transform_4, window_bounds = array<i64: 8, 64>}, {pipeline_mode = #tpu.pipeline_mode<synchronous>, transform_indices = @transform_5, window_bounds = array<i64: 64, 64>}, {pipeline_mode = #tpu.pipeline_mode<synchronous>, transform_indices = @transform_6, window_bounds = array<i64: 1, 64>}, {pipeline_mode = #tpu.pipeline_mode<synchronous>, transform_indices = @transform_7, window_bounds = array<i64: 4, 64>}, {pipeline_mode = #tpu.pipeline_mode<synchronous>, transform_indices = @transform_8, window_bounds = array<i64: 1, 64>}, {pipeline_mode = #tpu.pipeline_mode<synchronous>, transform_indices = @transform_9, window_bounds = array<i64: 32, 64>}, {pipeline_mode = #tpu.pipeline_mode<synchronous>, transform_indices = @transform_10, window_bounds = array<i64: 1, 32>}, {pipeline_mode = #tpu.pipeline_mode<synchronous>, transform_indices = @transform_11, window_bounds = array<i64: 1, 32>}, {pipeline_mode = #tpu.pipeline_mode<synchronous>, transform_indices = @transform_12, window_bounds = array<i64: 1, 32>}, {pipeline_mode = #tpu.pipeline_mode<synchronous>, transform_indices = @transform_13, window_bounds = array<i64: 1, 32>}, {pipeline_mode = #tpu.pipeline_mode<synchronous>, transform_indices = @transform_14, window_bounds = array<i64: 128, 32>}, {pipeline_mode = #tpu.pipeline_mode<synchronous>, transform_indices = @transform_15, window_bounds = array<i64: 4, 64>}, {pipeline_mode = #tpu.pipeline_mode<synchronous>, transform_indices = @transform_16, window_bounds = array<i64: 1, 64>}, {pipeline_mode = #tpu.pipeline_mode<synchronous>, transform_indices = @transform_17, window_bounds = array<i64: 8, 64>}, {pipeline_mode = #tpu.pipeline_mode<synchronous>, transform_indices = @transform_18, window_bounds = array<i64: 64, 64>}, {pipeline_mode = #tpu.pipeline_mode<synchronous>, transform_indices = @transform_19, window_bounds = array<i64: 1, 64>}, {pipeline_mode = #tpu.pipeline_mode<synchronous>, transform_indices = @transform_20, window_bounds = array<i64: 4, 64>}, {pipeline_mode = #tpu.pipeline_mode<synchronous>, transform_indices = @transform_21, window_bounds = array<i64: 1, 64>}, {pipeline_mode = #tpu.pipeline_mode<synchronous>, transform_indices = @transform_22, window_bounds = array<i64: 32, 64>}, {pipeline_mode = #tpu.pipeline_mode<synchronous>, transform_indices = @transform_23, window_bounds = array<i64: 1, 32>}, {pipeline_mode = #tpu.pipeline_mode<synchronous>, transform_indices = @transform_24, window_bounds = array<i64: 1, 32>}, {pipeline_mode = #tpu.pipeline_mode<synchronous>, transform_indices = @transform_25, window_bounds = array<i64: 1, 32>}, {pipeline_mode = #tpu.pipeline_mode<synchronous>, transform_indices = @transform_26, window_bounds = array<i64: 1, 32>}, {transform_indices = @transform_27, window_bounds = array<i64: 1, 8, 32>}]} {
    %c0 = arith.constant 0 : index
    %c0_0 = arith.constant 0 : index
    %c0_1 = arith.constant 0 : index
    %0 = vector.load %arg1[%c0, %c0_0, %c0_1] : memref<1x8x32xf32, #tpu.memory_space<vmem>>, vector<1x8x32xf32>
    %1 = vector.shape_cast %0 : vector<1x8x32xf32> to vector<8x32xf32>
    %c0_2 = arith.constant 0 : index
    %c0_3 = arith.constant 0 : index
    %2 = vector.load %arg2[%c0_2, %c0_3] : memref<128x32xf32, #tpu.memory_space<vmem>>, vector<128x32xf32>
    %c0_4 = arith.constant 0 : index
    %c0_5 = arith.constant 0 : index
    %3 = vector.load %arg3[%c0_4, %c0_5] : memref<4x64xf32, #tpu.memory_space<vmem>>, vector<4x64xf32>
    %c0_6 = arith.constant 0 : index
    %c0_7 = arith.constant 0 : index
    %4 = vector.load %arg4[%c0_6, %c0_7] : memref<1x64xf32, #tpu.memory_space<vmem>>, vector<1x64xf32>
    %c0_8 = arith.constant 0 : index
    %c0_9 = arith.constant 0 : index
    %5 = vector.load %arg5[%c0_8, %c0_9] : memref<8x64xf32, #tpu.memory_space<vmem>>, vector<8x64xf32>
    %c0_10 = arith.constant 0 : index
    %c0_11 = arith.constant 0 : index
    %6 = vector.load %arg6[%c0_10, %c0_11] : memref<64x64xf32, #tpu.memory_space<vmem>>, vector<64x64xf32>
    %c0_12 = arith.constant 0 : index
    %c0_13 = arith.constant 0 : index
    %7 = vector.load %arg7[%c0_12, %c0_13] : memref<1x64xf32, #tpu.memory_space<vmem>>, vector<1x64xf32>
    %c0_14 = arith.constant 0 : index
    %c0_15 = arith.constant 0 : index
    %8 = vector.load %arg8[%c0_14, %c0_15] : memref<4x64xf32, #tpu.memory_space<vmem>>, vector<4x64xf32>
    %c0_16 = arith.constant 0 : index
    %c0_17 = arith.constant 0 : index
    %9 = vector.load %arg9[%c0_16, %c0_17] : memref<1x64xf32, #tpu.memory_space<vmem>>, vector<1x64xf32>
    %c0_18 = arith.constant 0 : index
    %c0_19 = arith.constant 0 : index
    %10 = vector.load %arg10[%c0_18, %c0_19] : memref<32x64xf32, #tpu.memory_space<vmem>>, vector<32x64xf32>
    %c0_20 = arith.constant 0 : index
    %c0_21 = arith.constant 0 : index
    %11 = vector.load %arg11[%c0_20, %c0_21] : memref<1x32xf32, #tpu.memory_space<vmem>>, vector<1x32xf32>
    %c0_22 = arith.constant 0 : index
    %c0_23 = arith.constant 0 : index
    %12 = vector.load %arg12[%c0_22, %c0_23] : memref<1x32xf32, #tpu.memory_space<vmem>>, vector<1x32xf32>
    %c0_24 = arith.constant 0 : index
    %c0_25 = arith.constant 0 : index
    %13 = vector.load %arg13[%c0_24, %c0_25] : memref<1x32xf32, #tpu.memory_space<vmem>>, vector<1x32xf32>
    %c0_26 = arith.constant 0 : index
    %c0_27 = arith.constant 0 : index
    %14 = vector.load %arg14[%c0_26, %c0_27] : memref<1x32xf32, #tpu.memory_space<vmem>>, vector<1x32xf32>
    %cst = arith.constant dense<0.000000e+00> : vector<8x128xf32>
    %15 = tpu.matmul %1, %2, %cst {dimension_numbers = #tpu.dot_dimension_numbers<[1], [1], [0], [0], [0, 0, 1, 0], [], []>, precision = #tpu.contract_precision<fp32>} : vector<8x32xf32>, vector<128x32xf32>, vector<8x128xf32> -> vector<8x128xf32>
    %16 = vector.extract_strided_slice %15 {offsets = [0, 0], sizes = [8, 64], strides = [1, 1]} : vector<8x128xf32> to vector<8x64xf32>
    %17 = vector.extract_strided_slice %15 {offsets = [0, 64], sizes = [8, 64], strides = [1, 1]} : vector<8x128xf32> to vector<8x64xf32>
    %18 = vector.extract_strided_slice %3 {offsets = [3, 0], sizes = [1, 64], strides = [1, 1]} : vector<4x64xf32> to vector<1x64xf32>
    %19 = vector.broadcast %18 : vector<1x64xf32> to vector<8x64xf32>
    %20 = arith.mulf %19, %16 : vector<8x64xf32>
    %21 = vector.broadcast %4 : vector<1x64xf32> to vector<8x64xf32>
    %22 = arith.addf %21, %20 : vector<8x64xf32>
    %23 = vector.extract_strided_slice %3 {offsets = [2, 0], sizes = [1, 64], strides = [1, 1]} : vector<4x64xf32> to vector<1x64xf32>
    %cst_28 = arith.constant 0.000000e+00 : f32
    %24 = vector.broadcast %cst_28 : f32 to vector<1x64xf32>
    %25 = vector.extract_strided_slice %16 {offsets = [0, 0], sizes = [7, 64], strides = [1, 1]} : vector<8x64xf32> to vector<7x64xf32>
    %26 = tpu.concatenate %24, %25 in 0 : vector<1x64xf32>, vector<7x64xf32> -> vector<8x64xf32>
    %27 = vector.broadcast %23 : vector<1x64xf32> to vector<8x64xf32>
    %28 = arith.mulf %27, %26 : vector<8x64xf32>
    %29 = arith.addf %22, %28 : vector<8x64xf32>
    %30 = vector.extract_strided_slice %3 {offsets = [1, 0], sizes = [1, 64], strides = [1, 1]} : vector<4x64xf32> to vector<1x64xf32>
    %cst_29 = arith.constant 0.000000e+00 : f32
    %31 = vector.broadcast %cst_29 : f32 to vector<2x64xf32>
    %32 = vector.extract_strided_slice %16 {offsets = [0, 0], sizes = [6, 64], strides = [1, 1]} : vector<8x64xf32> to vector<6x64xf32>
    %33 = tpu.concatenate %31, %32 in 0 : vector<2x64xf32>, vector<6x64xf32> -> vector<8x64xf32>
    %34 = vector.broadcast %30 : vector<1x64xf32> to vector<8x64xf32>
    %35 = arith.mulf %34, %33 : vector<8x64xf32>
    %36 = arith.addf %29, %35 : vector<8x64xf32>
    %37 = vector.extract_strided_slice %3 {offsets = [0, 0], sizes = [1, 64], strides = [1, 1]} : vector<4x64xf32> to vector<1x64xf32>
    %cst_30 = arith.constant 0.000000e+00 : f32
    %38 = vector.broadcast %cst_30 : f32 to vector<3x64xf32>
    %39 = vector.extract_strided_slice %16 {offsets = [0, 0], sizes = [5, 64], strides = [1, 1]} : vector<8x64xf32> to vector<5x64xf32>
    %40 = tpu.concatenate %38, %39 in 0 : vector<3x64xf32>, vector<5x64xf32> -> vector<8x64xf32>
    %41 = vector.broadcast %37 : vector<1x64xf32> to vector<8x64xf32>
    %42 = arith.mulf %41, %40 : vector<8x64xf32>
    %43 = arith.addf %36, %42 : vector<8x64xf32>
    %cst_31 = arith.constant 0.000000e+00 : f32
    %44 = vector.broadcast %cst_31 : f32 to vector<8x64xf32>
    %45 = arith.subf %44, %43 : vector<8x64xf32>
    %46 = math.exp %45 : vector<8x64xf32>
    %cst_32 = arith.constant 1.000000e+00 : f32
    %47 = vector.broadcast %cst_32 : f32 to vector<8x64xf32>
    %48 = arith.addf %47, %46 : vector<8x64xf32>
    %49 = tpu.reciprocal %48 {approx = true} : vector<8x64xf32> -> vector<8x64xf32>
    %50 = arith.mulf %43, %49 : vector<8x64xf32>
    %cst_33 = arith.constant dense<0.000000e+00> : vector<8x8xf32>
    %51 = tpu.matmul %50, %5, %cst_33 {dimension_numbers = #tpu.dot_dimension_numbers<[1], [1], [0], [0], [0, 0, 1, 0], [], []>, precision = #tpu.contract_precision<fp32>} : vector<8x64xf32>, vector<8x64xf32>, vector<8x8xf32> -> vector<8x8xf32>
    %52 = vector.extract_strided_slice %51 {offsets = [0, 0], sizes = [8, 4], strides = [1, 1]} : vector<8x8xf32> to vector<8x4xf32>
    %53 = vector.extract_strided_slice %51 {offsets = [0, 4], sizes = [8, 4], strides = [1, 1]} : vector<8x8xf32> to vector<8x4xf32>
    %cst_34 = arith.constant dense<0.000000e+00> : vector<8x64xf32>
    %54 = tpu.matmul %50, %6, %cst_34 {dimension_numbers = #tpu.dot_dimension_numbers<[1], [1], [0], [0], [0, 0, 1, 0], [], []>, precision = #tpu.contract_precision<fp32>} : vector<8x64xf32>, vector<64x64xf32>, vector<8x64xf32> -> vector<8x64xf32>
    %55 = vector.broadcast %7 : vector<1x64xf32> to vector<8x64xf32>
    %56 = arith.addf %54, %55 : vector<8x64xf32>
    %cst_35 = arith.constant 0.000000e+00 : f32
    %57 = vector.broadcast %cst_35 : f32 to vector<8x64xf32>
    %58 = arith.maximumf %56, %57 : vector<8x64xf32>
    %59 = math.absf %56 : vector<8x64xf32>
    %cst_36 = arith.constant 0.000000e+00 : f32
    %60 = vector.broadcast %cst_36 : f32 to vector<8x64xf32>
    %61 = arith.subf %60, %59 : vector<8x64xf32>
    %62 = math.exp %61 : vector<8x64xf32>
    %cst_37 = arith.constant 1.000000e+00 : f32
    %63 = vector.broadcast %cst_37 : f32 to vector<8x64xf32>
    %64 = arith.addf %63, %62 : vector<8x64xf32>
    %65 = math.log %64 : vector<8x64xf32>
    %66 = arith.addf %58, %65 : vector<8x64xf32>
    %67 = arith.mulf %66, %50 : vector<8x64xf32>
    %68 = vector.extract_strided_slice %8 {offsets = [0, 0], sizes = [1, 64], strides = [1, 1]} : vector<4x64xf32> to vector<1x64xf32>
    %69 = vector.broadcast %68 : vector<1x64xf32> to vector<8x64xf32>
    %70 = arith.mulf %66, %69 : vector<8x64xf32>
    %71 = vector.extract_strided_slice %8 {offsets = [1, 0], sizes = [1, 64], strides = [1, 1]} : vector<4x64xf32> to vector<1x64xf32>
    %72 = vector.broadcast %71 : vector<1x64xf32> to vector<8x64xf32>
    %73 = arith.mulf %66, %72 : vector<8x64xf32>
    %74 = vector.extract_strided_slice %8 {offsets = [2, 0], sizes = [1, 64], strides = [1, 1]} : vector<4x64xf32> to vector<1x64xf32>
    %75 = vector.broadcast %74 : vector<1x64xf32> to vector<8x64xf32>
    %76 = arith.mulf %66, %75 : vector<8x64xf32>
    %77 = vector.extract_strided_slice %8 {offsets = [3, 0], sizes = [1, 64], strides = [1, 1]} : vector<4x64xf32> to vector<1x64xf32>
    %78 = vector.broadcast %77 : vector<1x64xf32> to vector<8x64xf32>
    %79 = arith.mulf %66, %78 : vector<8x64xf32>
    %80 = tpu.concatenate %70, %73, %76, %79 in 1 : vector<8x64xf32>, vector<8x64xf32>, vector<8x64xf32>, vector<8x64xf32> -> vector<8x256xf32>
    %81 = math.exp %80 : vector<8x256xf32>
    %82 = vector.extract_strided_slice %52 {offsets = [0, 0], sizes = [8, 1], strides = [1, 1]} : vector<8x4xf32> to vector<8x1xf32>
    %83 = vector.broadcast %82 : vector<8x1xf32> to vector<8x64xf32>
    %84 = arith.mulf %83, %67 : vector<8x64xf32>
    %85 = vector.extract_strided_slice %52 {offsets = [0, 1], sizes = [8, 1], strides = [1, 1]} : vector<8x4xf32> to vector<8x1xf32>
    %86 = vector.broadcast %85 : vector<8x1xf32> to vector<8x64xf32>
    %87 = arith.mulf %86, %67 : vector<8x64xf32>
    %88 = vector.extract_strided_slice %52 {offsets = [0, 2], sizes = [8, 1], strides = [1, 1]} : vector<8x4xf32> to vector<8x1xf32>
    %89 = vector.broadcast %88 : vector<8x1xf32> to vector<8x64xf32>
    %90 = arith.mulf %89, %67 : vector<8x64xf32>
    %91 = vector.extract_strided_slice %52 {offsets = [0, 3], sizes = [8, 1], strides = [1, 1]} : vector<8x4xf32> to vector<8x1xf32>
    %92 = vector.broadcast %91 : vector<8x1xf32> to vector<8x64xf32>
    %93 = arith.mulf %92, %67 : vector<8x64xf32>
    %94 = tpu.concatenate %84, %87, %90, %93 in 1 : vector<8x64xf32>, vector<8x64xf32>, vector<8x64xf32>, vector<8x64xf32> -> vector<8x256xf32>
    %cst_38 = arith.constant 0.000000e+00 : f32
    %95 = vector.broadcast %cst_38 : f32 to vector<1x256xf32>
    %96 = vector.extract_strided_slice %94 {offsets = [0, 0], sizes = [7, 256], strides = [1, 1]} : vector<8x256xf32> to vector<7x256xf32>
    %97 = tpu.concatenate %95, %96 in 0 : vector<1x256xf32>, vector<7x256xf32> -> vector<8x256xf32>
    %98 = arith.mulf %81, %97 : vector<8x256xf32>
    %99 = arith.addf %98, %94 : vector<8x256xf32>
    %cst_39 = arith.constant 1.000000e+00 : f32
    %100 = vector.broadcast %cst_39 : f32 to vector<1x256xf32>
    %101 = vector.extract_strided_slice %81 {offsets = [0, 0], sizes = [7, 256], strides = [1, 1]} : vector<8x256xf32> to vector<7x256xf32>
    %102 = tpu.concatenate %100, %101 in 0 : vector<1x256xf32>, vector<7x256xf32> -> vector<8x256xf32>
    %103 = arith.mulf %81, %102 : vector<8x256xf32>
    %cst_40 = arith.constant 0.000000e+00 : f32
    %104 = vector.broadcast %cst_40 : f32 to vector<2x256xf32>
    %105 = vector.extract_strided_slice %99 {offsets = [0, 0], sizes = [6, 256], strides = [1, 1]} : vector<8x256xf32> to vector<6x256xf32>
    %106 = tpu.concatenate %104, %105 in 0 : vector<2x256xf32>, vector<6x256xf32> -> vector<8x256xf32>
    %107 = arith.mulf %103, %106 : vector<8x256xf32>
    %108 = arith.addf %107, %99 : vector<8x256xf32>
    %cst_41 = arith.constant 1.000000e+00 : f32
    %109 = vector.broadcast %cst_41 : f32 to vector<2x256xf32>
    %110 = vector.extract_strided_slice %103 {offsets = [0, 0], sizes = [6, 256], strides = [1, 1]} : vector<8x256xf32> to vector<6x256xf32>
    %111 = tpu.concatenate %109, %110 in 0 : vector<2x256xf32>, vector<6x256xf32> -> vector<8x256xf32>
    %112 = arith.mulf %103, %111 : vector<8x256xf32>
    %cst_42 = arith.constant 0.000000e+00 : f32
    %113 = vector.broadcast %cst_42 : f32 to vector<4x256xf32>
    %114 = vector.extract_strided_slice %108 {offsets = [0, 0], sizes = [4, 256], strides = [1, 1]} : vector<8x256xf32> to vector<4x256xf32>
    %115 = tpu.concatenate %113, %114 in 0 : vector<4x256xf32>, vector<4x256xf32> -> vector<8x256xf32>
    %116 = arith.mulf %112, %115 : vector<8x256xf32>
    %117 = arith.addf %116, %108 : vector<8x256xf32>
    %118 = vector.broadcast %9 : vector<1x64xf32> to vector<8x64xf32>
    %119 = arith.mulf %118, %50 : vector<8x64xf32>
    %120 = vector.extract_strided_slice %53 {offsets = [0, 0], sizes = [8, 1], strides = [1, 1]} : vector<8x4xf32> to vector<8x1xf32>
    %121 = vector.extract_strided_slice %117 {offsets = [0, 0], sizes = [8, 64], strides = [1, 1]} : vector<8x256xf32> to vector<8x64xf32>
    %122 = vector.broadcast %120 : vector<8x1xf32> to vector<8x64xf32>
    %123 = arith.mulf %122, %121 : vector<8x64xf32>
    %124 = arith.addf %119, %123 : vector<8x64xf32>
    %125 = vector.extract_strided_slice %53 {offsets = [0, 1], sizes = [8, 1], strides = [1, 1]} : vector<8x4xf32> to vector<8x1xf32>
    %126 = vector.extract_strided_slice %117 {offsets = [0, 64], sizes = [8, 64], strides = [1, 1]} : vector<8x256xf32> to vector<8x64xf32>
    %127 = vector.broadcast %125 : vector<8x1xf32> to vector<8x64xf32>
    %128 = arith.mulf %127, %126 : vector<8x64xf32>
    %129 = arith.addf %124, %128 : vector<8x64xf32>
    %130 = vector.extract_strided_slice %53 {offsets = [0, 2], sizes = [8, 1], strides = [1, 1]} : vector<8x4xf32> to vector<8x1xf32>
    %131 = vector.extract_strided_slice %117 {offsets = [0, 128], sizes = [8, 64], strides = [1, 1]} : vector<8x256xf32> to vector<8x64xf32>
    %132 = vector.broadcast %130 : vector<8x1xf32> to vector<8x64xf32>
    %133 = arith.mulf %132, %131 : vector<8x64xf32>
    %134 = arith.addf %129, %133 : vector<8x64xf32>
    %135 = vector.extract_strided_slice %53 {offsets = [0, 3], sizes = [8, 1], strides = [1, 1]} : vector<8x4xf32> to vector<8x1xf32>
    %136 = vector.extract_strided_slice %117 {offsets = [0, 192], sizes = [8, 64], strides = [1, 1]} : vector<8x256xf32> to vector<8x64xf32>
    %137 = vector.broadcast %135 : vector<8x1xf32> to vector<8x64xf32>
    %138 = arith.mulf %137, %136 : vector<8x64xf32>
    %139 = arith.addf %134, %138 : vector<8x64xf32>
    %cst_43 = arith.constant 0.000000e+00 : f32
    %140 = vector.broadcast %cst_43 : f32 to vector<8x64xf32>
    %141 = arith.subf %140, %17 : vector<8x64xf32>
    %142 = math.exp %141 : vector<8x64xf32>
    %cst_44 = arith.constant 1.000000e+00 : f32
    %143 = vector.broadcast %cst_44 : f32 to vector<8x64xf32>
    %144 = arith.addf %143, %142 : vector<8x64xf32>
    %145 = tpu.reciprocal %144 {approx = true} : vector<8x64xf32> -> vector<8x64xf32>
    %146 = arith.mulf %17, %145 : vector<8x64xf32>
    %147 = arith.mulf %139, %146 : vector<8x64xf32>
    %cst_45 = arith.constant dense<0.000000e+00> : vector<8x32xf32>
    %148 = tpu.matmul %147, %10, %cst_45 {dimension_numbers = #tpu.dot_dimension_numbers<[1], [1], [0], [0], [0, 0, 1, 0], [], []>, precision = #tpu.contract_precision<fp32>} : vector<8x64xf32>, vector<32x64xf32>, vector<8x32xf32> -> vector<8x32xf32>
    %149 = arith.addf %1, %148 : vector<8x32xf32>
    %150 = vector.broadcast %13 : vector<1x32xf32> to vector<8x32xf32>
    %151 = arith.subf %149, %150 : vector<8x32xf32>
    %cst_46 = arith.constant 9.99999974E-6 : f32
    %152 = vector.broadcast %cst_46 : f32 to vector<1x32xf32>
    %153 = arith.addf %14, %152 : vector<1x32xf32>
    %154 = math.rsqrt %153 : vector<1x32xf32>
    %155 = vector.broadcast %154 : vector<1x32xf32> to vector<8x32xf32>
    %156 = arith.mulf %151, %155 : vector<8x32xf32>
    %157 = vector.broadcast %11 : vector<1x32xf32> to vector<8x32xf32>
    %158 = arith.mulf %156, %157 : vector<8x32xf32>
    %159 = vector.broadcast %12 : vector<1x32xf32> to vector<8x32xf32>
    %160 = arith.addf %158, %159 : vector<8x32xf32>
    %c0_47 = arith.constant 0 : index
    %c0_48 = arith.constant 0 : index
    %161 = vector.load %arg15[%c0_47, %c0_48] : memref<128x32xf32, #tpu.memory_space<vmem>>, vector<128x32xf32>
    %c0_49 = arith.constant 0 : index
    %c0_50 = arith.constant 0 : index
    %162 = vector.load %arg16[%c0_49, %c0_50] : memref<4x64xf32, #tpu.memory_space<vmem>>, vector<4x64xf32>
    %c0_51 = arith.constant 0 : index
    %c0_52 = arith.constant 0 : index
    %163 = vector.load %arg17[%c0_51, %c0_52] : memref<1x64xf32, #tpu.memory_space<vmem>>, vector<1x64xf32>
    %c0_53 = arith.constant 0 : index
    %c0_54 = arith.constant 0 : index
    %164 = vector.load %arg18[%c0_53, %c0_54] : memref<8x64xf32, #tpu.memory_space<vmem>>, vector<8x64xf32>
    %c0_55 = arith.constant 0 : index
    %c0_56 = arith.constant 0 : index
    %165 = vector.load %arg19[%c0_55, %c0_56] : memref<64x64xf32, #tpu.memory_space<vmem>>, vector<64x64xf32>
    %c0_57 = arith.constant 0 : index
    %c0_58 = arith.constant 0 : index
    %166 = vector.load %arg20[%c0_57, %c0_58] : memref<1x64xf32, #tpu.memory_space<vmem>>, vector<1x64xf32>
    %c0_59 = arith.constant 0 : index
    %c0_60 = arith.constant 0 : index
    %167 = vector.load %arg21[%c0_59, %c0_60] : memref<4x64xf32, #tpu.memory_space<vmem>>, vector<4x64xf32>
    %c0_61 = arith.constant 0 : index
    %c0_62 = arith.constant 0 : index
    %168 = vector.load %arg22[%c0_61, %c0_62] : memref<1x64xf32, #tpu.memory_space<vmem>>, vector<1x64xf32>
    %c0_63 = arith.constant 0 : index
    %c0_64 = arith.constant 0 : index
    %169 = vector.load %arg23[%c0_63, %c0_64] : memref<32x64xf32, #tpu.memory_space<vmem>>, vector<32x64xf32>
    %c0_65 = arith.constant 0 : index
    %c0_66 = arith.constant 0 : index
    %170 = vector.load %arg24[%c0_65, %c0_66] : memref<1x32xf32, #tpu.memory_space<vmem>>, vector<1x32xf32>
    %c0_67 = arith.constant 0 : index
    %c0_68 = arith.constant 0 : index
    %171 = vector.load %arg25[%c0_67, %c0_68] : memref<1x32xf32, #tpu.memory_space<vmem>>, vector<1x32xf32>
    %c0_69 = arith.constant 0 : index
    %c0_70 = arith.constant 0 : index
    %172 = vector.load %arg26[%c0_69, %c0_70] : memref<1x32xf32, #tpu.memory_space<vmem>>, vector<1x32xf32>
    %c0_71 = arith.constant 0 : index
    %c0_72 = arith.constant 0 : index
    %173 = vector.load %arg27[%c0_71, %c0_72] : memref<1x32xf32, #tpu.memory_space<vmem>>, vector<1x32xf32>
    %cst_73 = arith.constant dense<0.000000e+00> : vector<8x128xf32>
    %174 = tpu.matmul %160, %161, %cst_73 {dimension_numbers = #tpu.dot_dimension_numbers<[1], [1], [0], [0], [0, 0, 1, 0], [], []>, precision = #tpu.contract_precision<fp32>} : vector<8x32xf32>, vector<128x32xf32>, vector<8x128xf32> -> vector<8x128xf32>
    %175 = vector.extract_strided_slice %174 {offsets = [0, 0], sizes = [8, 64], strides = [1, 1]} : vector<8x128xf32> to vector<8x64xf32>
    %176 = vector.extract_strided_slice %174 {offsets = [0, 64], sizes = [8, 64], strides = [1, 1]} : vector<8x128xf32> to vector<8x64xf32>
    %177 = vector.extract_strided_slice %162 {offsets = [3, 0], sizes = [1, 64], strides = [1, 1]} : vector<4x64xf32> to vector<1x64xf32>
    %178 = vector.broadcast %177 : vector<1x64xf32> to vector<8x64xf32>
    %179 = arith.mulf %178, %175 : vector<8x64xf32>
    %180 = vector.broadcast %163 : vector<1x64xf32> to vector<8x64xf32>
    %181 = arith.addf %180, %179 : vector<8x64xf32>
    %182 = vector.extract_strided_slice %162 {offsets = [2, 0], sizes = [1, 64], strides = [1, 1]} : vector<4x64xf32> to vector<1x64xf32>
    %cst_74 = arith.constant 0.000000e+00 : f32
    %183 = vector.broadcast %cst_74 : f32 to vector<1x64xf32>
    %184 = vector.extract_strided_slice %175 {offsets = [0, 0], sizes = [7, 64], strides = [1, 1]} : vector<8x64xf32> to vector<7x64xf32>
    %185 = tpu.concatenate %183, %184 in 0 : vector<1x64xf32>, vector<7x64xf32> -> vector<8x64xf32>
    %186 = vector.broadcast %182 : vector<1x64xf32> to vector<8x64xf32>
    %187 = arith.mulf %186, %185 : vector<8x64xf32>
    %188 = arith.addf %181, %187 : vector<8x64xf32>
    %189 = vector.extract_strided_slice %162 {offsets = [1, 0], sizes = [1, 64], strides = [1, 1]} : vector<4x64xf32> to vector<1x64xf32>
    %cst_75 = arith.constant 0.000000e+00 : f32
    %190 = vector.broadcast %cst_75 : f32 to vector<2x64xf32>
    %191 = vector.extract_strided_slice %175 {offsets = [0, 0], sizes = [6, 64], strides = [1, 1]} : vector<8x64xf32> to vector<6x64xf32>
    %192 = tpu.concatenate %190, %191 in 0 : vector<2x64xf32>, vector<6x64xf32> -> vector<8x64xf32>
    %193 = vector.broadcast %189 : vector<1x64xf32> to vector<8x64xf32>
    %194 = arith.mulf %193, %192 : vector<8x64xf32>
    %195 = arith.addf %188, %194 : vector<8x64xf32>
    %196 = vector.extract_strided_slice %162 {offsets = [0, 0], sizes = [1, 64], strides = [1, 1]} : vector<4x64xf32> to vector<1x64xf32>
    %cst_76 = arith.constant 0.000000e+00 : f32
    %197 = vector.broadcast %cst_76 : f32 to vector<3x64xf32>
    %198 = vector.extract_strided_slice %175 {offsets = [0, 0], sizes = [5, 64], strides = [1, 1]} : vector<8x64xf32> to vector<5x64xf32>
    %199 = tpu.concatenate %197, %198 in 0 : vector<3x64xf32>, vector<5x64xf32> -> vector<8x64xf32>
    %200 = vector.broadcast %196 : vector<1x64xf32> to vector<8x64xf32>
    %201 = arith.mulf %200, %199 : vector<8x64xf32>
    %202 = arith.addf %195, %201 : vector<8x64xf32>
    %cst_77 = arith.constant 0.000000e+00 : f32
    %203 = vector.broadcast %cst_77 : f32 to vector<8x64xf32>
    %204 = arith.subf %203, %202 : vector<8x64xf32>
    %205 = math.exp %204 : vector<8x64xf32>
    %cst_78 = arith.constant 1.000000e+00 : f32
    %206 = vector.broadcast %cst_78 : f32 to vector<8x64xf32>
    %207 = arith.addf %206, %205 : vector<8x64xf32>
    %208 = tpu.reciprocal %207 {approx = true} : vector<8x64xf32> -> vector<8x64xf32>
    %209 = arith.mulf %202, %208 : vector<8x64xf32>
    %cst_79 = arith.constant dense<0.000000e+00> : vector<8x8xf32>
    %210 = tpu.matmul %209, %164, %cst_79 {dimension_numbers = #tpu.dot_dimension_numbers<[1], [1], [0], [0], [0, 0, 1, 0], [], []>, precision = #tpu.contract_precision<fp32>} : vector<8x64xf32>, vector<8x64xf32>, vector<8x8xf32> -> vector<8x8xf32>
    %211 = vector.extract_strided_slice %210 {offsets = [0, 0], sizes = [8, 4], strides = [1, 1]} : vector<8x8xf32> to vector<8x4xf32>
    %212 = vector.extract_strided_slice %210 {offsets = [0, 4], sizes = [8, 4], strides = [1, 1]} : vector<8x8xf32> to vector<8x4xf32>
    %cst_80 = arith.constant dense<0.000000e+00> : vector<8x64xf32>
    %213 = tpu.matmul %209, %165, %cst_80 {dimension_numbers = #tpu.dot_dimension_numbers<[1], [1], [0], [0], [0, 0, 1, 0], [], []>, precision = #tpu.contract_precision<fp32>} : vector<8x64xf32>, vector<64x64xf32>, vector<8x64xf32> -> vector<8x64xf32>
    %214 = vector.broadcast %166 : vector<1x64xf32> to vector<8x64xf32>
    %215 = arith.addf %213, %214 : vector<8x64xf32>
    %cst_81 = arith.constant 0.000000e+00 : f32
    %216 = vector.broadcast %cst_81 : f32 to vector<8x64xf32>
    %217 = arith.maximumf %215, %216 : vector<8x64xf32>
    %218 = math.absf %215 : vector<8x64xf32>
    %cst_82 = arith.constant 0.000000e+00 : f32
    %219 = vector.broadcast %cst_82 : f32 to vector<8x64xf32>
    %220 = arith.subf %219, %218 : vector<8x64xf32>
    %221 = math.exp %220 : vector<8x64xf32>
    %cst_83 = arith.constant 1.000000e+00 : f32
    %222 = vector.broadcast %cst_83 : f32 to vector<8x64xf32>
    %223 = arith.addf %222, %221 : vector<8x64xf32>
    %224 = math.log %223 : vector<8x64xf32>
    %225 = arith.addf %217, %224 : vector<8x64xf32>
    %226 = arith.mulf %225, %209 : vector<8x64xf32>
    %227 = vector.extract_strided_slice %167 {offsets = [0, 0], sizes = [1, 64], strides = [1, 1]} : vector<4x64xf32> to vector<1x64xf32>
    %228 = vector.broadcast %227 : vector<1x64xf32> to vector<8x64xf32>
    %229 = arith.mulf %225, %228 : vector<8x64xf32>
    %230 = vector.extract_strided_slice %167 {offsets = [1, 0], sizes = [1, 64], strides = [1, 1]} : vector<4x64xf32> to vector<1x64xf32>
    %231 = vector.broadcast %230 : vector<1x64xf32> to vector<8x64xf32>
    %232 = arith.mulf %225, %231 : vector<8x64xf32>
    %233 = vector.extract_strided_slice %167 {offsets = [2, 0], sizes = [1, 64], strides = [1, 1]} : vector<4x64xf32> to vector<1x64xf32>
    %234 = vector.broadcast %233 : vector<1x64xf32> to vector<8x64xf32>
    %235 = arith.mulf %225, %234 : vector<8x64xf32>
    %236 = vector.extract_strided_slice %167 {offsets = [3, 0], sizes = [1, 64], strides = [1, 1]} : vector<4x64xf32> to vector<1x64xf32>
    %237 = vector.broadcast %236 : vector<1x64xf32> to vector<8x64xf32>
    %238 = arith.mulf %225, %237 : vector<8x64xf32>
    %239 = tpu.concatenate %229, %232, %235, %238 in 1 : vector<8x64xf32>, vector<8x64xf32>, vector<8x64xf32>, vector<8x64xf32> -> vector<8x256xf32>
    %240 = math.exp %239 : vector<8x256xf32>
    %241 = vector.extract_strided_slice %211 {offsets = [0, 0], sizes = [8, 1], strides = [1, 1]} : vector<8x4xf32> to vector<8x1xf32>
    %242 = vector.broadcast %241 : vector<8x1xf32> to vector<8x64xf32>
    %243 = arith.mulf %242, %226 : vector<8x64xf32>
    %244 = vector.extract_strided_slice %211 {offsets = [0, 1], sizes = [8, 1], strides = [1, 1]} : vector<8x4xf32> to vector<8x1xf32>
    %245 = vector.broadcast %244 : vector<8x1xf32> to vector<8x64xf32>
    %246 = arith.mulf %245, %226 : vector<8x64xf32>
    %247 = vector.extract_strided_slice %211 {offsets = [0, 2], sizes = [8, 1], strides = [1, 1]} : vector<8x4xf32> to vector<8x1xf32>
    %248 = vector.broadcast %247 : vector<8x1xf32> to vector<8x64xf32>
    %249 = arith.mulf %248, %226 : vector<8x64xf32>
    %250 = vector.extract_strided_slice %211 {offsets = [0, 3], sizes = [8, 1], strides = [1, 1]} : vector<8x4xf32> to vector<8x1xf32>
    %251 = vector.broadcast %250 : vector<8x1xf32> to vector<8x64xf32>
    %252 = arith.mulf %251, %226 : vector<8x64xf32>
    %253 = tpu.concatenate %243, %246, %249, %252 in 1 : vector<8x64xf32>, vector<8x64xf32>, vector<8x64xf32>, vector<8x64xf32> -> vector<8x256xf32>
    %cst_84 = arith.constant 0.000000e+00 : f32
    %254 = vector.broadcast %cst_84 : f32 to vector<1x256xf32>
    %255 = vector.extract_strided_slice %253 {offsets = [0, 0], sizes = [7, 256], strides = [1, 1]} : vector<8x256xf32> to vector<7x256xf32>
    %256 = tpu.concatenate %254, %255 in 0 : vector<1x256xf32>, vector<7x256xf32> -> vector<8x256xf32>
    %257 = arith.mulf %240, %256 : vector<8x256xf32>
    %258 = arith.addf %257, %253 : vector<8x256xf32>
    %cst_85 = arith.constant 1.000000e+00 : f32
    %259 = vector.broadcast %cst_85 : f32 to vector<1x256xf32>
    %260 = vector.extract_strided_slice %240 {offsets = [0, 0], sizes = [7, 256], strides = [1, 1]} : vector<8x256xf32> to vector<7x256xf32>
    %261 = tpu.concatenate %259, %260 in 0 : vector<1x256xf32>, vector<7x256xf32> -> vector<8x256xf32>
    %262 = arith.mulf %240, %261 : vector<8x256xf32>
    %cst_86 = arith.constant 0.000000e+00 : f32
    %263 = vector.broadcast %cst_86 : f32 to vector<2x256xf32>
    %264 = vector.extract_strided_slice %258 {offsets = [0, 0], sizes = [6, 256], strides = [1, 1]} : vector<8x256xf32> to vector<6x256xf32>
    %265 = tpu.concatenate %263, %264 in 0 : vector<2x256xf32>, vector<6x256xf32> -> vector<8x256xf32>
    %266 = arith.mulf %262, %265 : vector<8x256xf32>
    %267 = arith.addf %266, %258 : vector<8x256xf32>
    %cst_87 = arith.constant 1.000000e+00 : f32
    %268 = vector.broadcast %cst_87 : f32 to vector<2x256xf32>
    %269 = vector.extract_strided_slice %262 {offsets = [0, 0], sizes = [6, 256], strides = [1, 1]} : vector<8x256xf32> to vector<6x256xf32>
    %270 = tpu.concatenate %268, %269 in 0 : vector<2x256xf32>, vector<6x256xf32> -> vector<8x256xf32>
    %271 = arith.mulf %262, %270 : vector<8x256xf32>
    %cst_88 = arith.constant 0.000000e+00 : f32
    %272 = vector.broadcast %cst_88 : f32 to vector<4x256xf32>
    %273 = vector.extract_strided_slice %267 {offsets = [0, 0], sizes = [4, 256], strides = [1, 1]} : vector<8x256xf32> to vector<4x256xf32>
    %274 = tpu.concatenate %272, %273 in 0 : vector<4x256xf32>, vector<4x256xf32> -> vector<8x256xf32>
    %275 = arith.mulf %271, %274 : vector<8x256xf32>
    %276 = arith.addf %275, %267 : vector<8x256xf32>
    %277 = vector.broadcast %168 : vector<1x64xf32> to vector<8x64xf32>
    %278 = arith.mulf %277, %209 : vector<8x64xf32>
    %279 = vector.extract_strided_slice %212 {offsets = [0, 0], sizes = [8, 1], strides = [1, 1]} : vector<8x4xf32> to vector<8x1xf32>
    %280 = vector.extract_strided_slice %276 {offsets = [0, 0], sizes = [8, 64], strides = [1, 1]} : vector<8x256xf32> to vector<8x64xf32>
    %281 = vector.broadcast %279 : vector<8x1xf32> to vector<8x64xf32>
    %282 = arith.mulf %281, %280 : vector<8x64xf32>
    %283 = arith.addf %278, %282 : vector<8x64xf32>
    %284 = vector.extract_strided_slice %212 {offsets = [0, 1], sizes = [8, 1], strides = [1, 1]} : vector<8x4xf32> to vector<8x1xf32>
    %285 = vector.extract_strided_slice %276 {offsets = [0, 64], sizes = [8, 64], strides = [1, 1]} : vector<8x256xf32> to vector<8x64xf32>
    %286 = vector.broadcast %284 : vector<8x1xf32> to vector<8x64xf32>
    %287 = arith.mulf %286, %285 : vector<8x64xf32>
    %288 = arith.addf %283, %287 : vector<8x64xf32>
    %289 = vector.extract_strided_slice %212 {offsets = [0, 2], sizes = [8, 1], strides = [1, 1]} : vector<8x4xf32> to vector<8x1xf32>
    %290 = vector.extract_strided_slice %276 {offsets = [0, 128], sizes = [8, 64], strides = [1, 1]} : vector<8x256xf32> to vector<8x64xf32>
    %291 = vector.broadcast %289 : vector<8x1xf32> to vector<8x64xf32>
    %292 = arith.mulf %291, %290 : vector<8x64xf32>
    %293 = arith.addf %288, %292 : vector<8x64xf32>
    %294 = vector.extract_strided_slice %212 {offsets = [0, 3], sizes = [8, 1], strides = [1, 1]} : vector<8x4xf32> to vector<8x1xf32>
    %295 = vector.extract_strided_slice %276 {offsets = [0, 192], sizes = [8, 64], strides = [1, 1]} : vector<8x256xf32> to vector<8x64xf32>
    %296 = vector.broadcast %294 : vector<8x1xf32> to vector<8x64xf32>
    %297 = arith.mulf %296, %295 : vector<8x64xf32>
    %298 = arith.addf %293, %297 : vector<8x64xf32>
    %cst_89 = arith.constant 0.000000e+00 : f32
    %299 = vector.broadcast %cst_89 : f32 to vector<8x64xf32>
    %300 = arith.subf %299, %176 : vector<8x64xf32>
    %301 = math.exp %300 : vector<8x64xf32>
    %cst_90 = arith.constant 1.000000e+00 : f32
    %302 = vector.broadcast %cst_90 : f32 to vector<8x64xf32>
    %303 = arith.addf %302, %301 : vector<8x64xf32>
    %304 = tpu.reciprocal %303 {approx = true} : vector<8x64xf32> -> vector<8x64xf32>
    %305 = arith.mulf %176, %304 : vector<8x64xf32>
    %306 = arith.mulf %298, %305 : vector<8x64xf32>
    %cst_91 = arith.constant dense<0.000000e+00> : vector<8x32xf32>
    %307 = tpu.matmul %306, %169, %cst_91 {dimension_numbers = #tpu.dot_dimension_numbers<[1], [1], [0], [0], [0, 0, 1, 0], [], []>, precision = #tpu.contract_precision<fp32>} : vector<8x64xf32>, vector<32x64xf32>, vector<8x32xf32> -> vector<8x32xf32>
    %308 = arith.addf %160, %307 : vector<8x32xf32>
    %309 = vector.broadcast %172 : vector<1x32xf32> to vector<8x32xf32>
    %310 = arith.subf %308, %309 : vector<8x32xf32>
    %cst_92 = arith.constant 9.99999974E-6 : f32
    %311 = vector.broadcast %cst_92 : f32 to vector<1x32xf32>
    %312 = arith.addf %173, %311 : vector<1x32xf32>
    %313 = math.rsqrt %312 : vector<1x32xf32>
    %314 = vector.broadcast %313 : vector<1x32xf32> to vector<8x32xf32>
    %315 = arith.mulf %310, %314 : vector<8x32xf32>
    %316 = vector.broadcast %170 : vector<1x32xf32> to vector<8x32xf32>
    %317 = arith.mulf %315, %316 : vector<8x32xf32>
    %318 = vector.broadcast %171 : vector<1x32xf32> to vector<8x32xf32>
    %319 = arith.addf %317, %318 : vector<8x32xf32>
    %c0_93 = arith.constant 0 : index
    %c0_94 = arith.constant 0 : index
    %c0_95 = arith.constant 0 : index
    %320 = vector.load %arg28[%c0_93, %c0_94, %c0_95] : memref<1x8x32xf32, #tpu.memory_space<vmem>>, vector<1x8x32xf32>
    %321 = vector.shape_cast %320 : vector<1x8x32xf32> to vector<8x32xf32>
    %322 = vector.shape_cast %319 : vector<8x32xf32> to vector<1x8x32xf32>
    tpu.vector_store %arg28[%c0_93, %c0_94, %c0_95], %322 {strides = array<i32>} : memref<1x8x32xf32, #tpu.memory_space<vmem>>, vector<1x8x32xf32>,
    return
  }
  func.func @transform_0(%arg0: i32) -> (i32, i32, i32) {
    %c0_i32 = arith.constant 0 : i32
    %c0_i32_0 = arith.constant 0 : i32
    %c0_i32_1 = arith.constant 0 : i32
    return %arg0, %c0_i32, %c0_i32_0 : i32, i32, i32
  }
  func.func @transform_1(%arg0: i32) -> (i32, i32) {
    %c0_i32 = arith.constant 0 : i32
    %c0_i32_0 = arith.constant 0 : i32
    %c0_i32_1 = arith.constant 0 : i32
    return %c0_i32, %c0_i32_0 : i32, i32
  }
  func.func @transform_2(%arg0: i32) -> (i32, i32) {
    %c0_i32 = arith.constant 0 : i32
    %c0_i32_0 = arith.constant 0 : i32
    %c0_i32_1 = arith.constant 0 : i32
    return %c0_i32, %c0_i32_0 : i32, i32
  }
  func.func @transform_3(%arg0: i32) -> (i32, i32) {
    %c0_i32 = arith.constant 0 : i32
    %c0_i32_0 = arith.constant 0 : i32
    %c0_i32_1 = arith.constant 0 : i32
    return %c0_i32, %c0_i32_0 : i32, i32
  }
  func.func @transform_4(%arg0: i32) -> (i32, i32) {
    %c0_i32 = arith.constant 0 : i32
    %c0_i32_0 = arith.constant 0 : i32
    %c0_i32_1 = arith.constant 0 : i32
    return %c0_i32, %c0_i32_0 : i32, i32
  }
  func.func @transform_5(%arg0: i32) -> (i32, i32) {
    %c0_i32 = arith.constant 0 : i32
    %c0_i32_0 = arith.constant 0 : i32
    %c0_i32_1 = arith.constant 0 : i32
    return %c0_i32, %c0_i32_0 : i32, i32
  }
  func.func @transform_6(%arg0: i32) -> (i32, i32) {
    %c0_i32 = arith.constant 0 : i32
    %c0_i32_0 = arith.constant 0 : i32
    %c0_i32_1 = arith.constant 0 : i32
    return %c0_i32, %c0_i32_0 : i32, i32
  }
  func.func @transform_7(%arg0: i32) -> (i32, i32) {
    %c0_i32 = arith.constant 0 : i32
    %c0_i32_0 = arith.constant 0 : i32
    %c0_i32_1 = arith.constant 0 : i32
    return %c0_i32, %c0_i32_0 : i32, i32
  }
  func.func @transform_8(%arg0: i32) -> (i32, i32) {
    %c0_i32 = arith.constant 0 : i32
    %c0_i32_0 = arith.constant 0 : i32
    %c0_i32_1 = arith.constant 0 : i32
    return %c0_i32, %c0_i32_0 : i32, i32
  }
  func.func @transform_9(%arg0: i32) -> (i32, i32) {
    %c0_i32 = arith.constant 0 : i32
    %c0_i32_0 = arith.constant 0 : i32
    %c0_i32_1 = arith.constant 0 : i32
    return %c0_i32, %c0_i32_0 : i32, i32
  }
  func.func @transform_10(%arg0: i32) -> (i32, i32) {
    %c0_i32 = arith.constant 0 : i32
    %c0_i32_0 = arith.constant 0 : i32
    %c0_i32_1 = arith.constant 0 : i32
    return %c0_i32, %c0_i32_0 : i32, i32
  }
  func.func @transform_11(%arg0: i32) -> (i32, i32) {
    %c0_i32 = arith.constant 0 : i32
    %c0_i32_0 = arith.constant 0 : i32
    %c0_i32_1 = arith.constant 0 : i32
    return %c0_i32, %c0_i32_0 : i32, i32
  }
  func.func @transform_12(%arg0: i32) -> (i32, i32) {
    %c0_i32 = arith.constant 0 : i32
    %c0_i32_0 = arith.constant 0 : i32
    %c0_i32_1 = arith.constant 0 : i32
    return %c0_i32, %c0_i32_0 : i32, i32
  }
  func.func @transform_13(%arg0: i32) -> (i32, i32) {
    %c0_i32 = arith.constant 0 : i32
    %c0_i32_0 = arith.constant 0 : i32
    %c0_i32_1 = arith.constant 0 : i32
    return %c0_i32, %c0_i32_0 : i32, i32
  }
  func.func @transform_14(%arg0: i32) -> (i32, i32) {
    %c0_i32 = arith.constant 0 : i32
    %c0_i32_0 = arith.constant 0 : i32
    %c0_i32_1 = arith.constant 0 : i32
    return %c0_i32, %c0_i32_0 : i32, i32
  }
  func.func @transform_15(%arg0: i32) -> (i32, i32) {
    %c0_i32 = arith.constant 0 : i32
    %c0_i32_0 = arith.constant 0 : i32
    %c0_i32_1 = arith.constant 0 : i32
    return %c0_i32, %c0_i32_0 : i32, i32
  }
  func.func @transform_16(%arg0: i32) -> (i32, i32) {
    %c0_i32 = arith.constant 0 : i32
    %c0_i32_0 = arith.constant 0 : i32
    %c0_i32_1 = arith.constant 0 : i32
    return %c0_i32, %c0_i32_0 : i32, i32
  }
  func.func @transform_17(%arg0: i32) -> (i32, i32) {
    %c0_i32 = arith.constant 0 : i32
    %c0_i32_0 = arith.constant 0 : i32
    %c0_i32_1 = arith.constant 0 : i32
    return %c0_i32, %c0_i32_0 : i32, i32
  }
  func.func @transform_18(%arg0: i32) -> (i32, i32) {
    %c0_i32 = arith.constant 0 : i32
    %c0_i32_0 = arith.constant 0 : i32
    %c0_i32_1 = arith.constant 0 : i32
    return %c0_i32, %c0_i32_0 : i32, i32
  }
  func.func @transform_19(%arg0: i32) -> (i32, i32) {
    %c0_i32 = arith.constant 0 : i32
    %c0_i32_0 = arith.constant 0 : i32
    %c0_i32_1 = arith.constant 0 : i32
    return %c0_i32, %c0_i32_0 : i32, i32
  }
  func.func @transform_20(%arg0: i32) -> (i32, i32) {
    %c0_i32 = arith.constant 0 : i32
    %c0_i32_0 = arith.constant 0 : i32
    %c0_i32_1 = arith.constant 0 : i32
    return %c0_i32, %c0_i32_0 : i32, i32
  }
  func.func @transform_21(%arg0: i32) -> (i32, i32) {
    %c0_i32 = arith.constant 0 : i32
    %c0_i32_0 = arith.constant 0 : i32
    %c0_i32_1 = arith.constant 0 : i32
    return %c0_i32, %c0_i32_0 : i32, i32
  }
  func.func @transform_22(%arg0: i32) -> (i32, i32) {
    %c0_i32 = arith.constant 0 : i32
    %c0_i32_0 = arith.constant 0 : i32
    %c0_i32_1 = arith.constant 0 : i32
    return %c0_i32, %c0_i32_0 : i32, i32
  }
  func.func @transform_23(%arg0: i32) -> (i32, i32) {
    %c0_i32 = arith.constant 0 : i32
    %c0_i32_0 = arith.constant 0 : i32
    %c0_i32_1 = arith.constant 0 : i32
    return %c0_i32, %c0_i32_0 : i32, i32
  }
  func.func @transform_24(%arg0: i32) -> (i32, i32) {
    %c0_i32 = arith.constant 0 : i32
    %c0_i32_0 = arith.constant 0 : i32
    %c0_i32_1 = arith.constant 0 : i32
    return %c0_i32, %c0_i32_0 : i32, i32
  }
  func.func @transform_25(%arg0: i32) -> (i32, i32) {
    %c0_i32 = arith.constant 0 : i32
    %c0_i32_0 = arith.constant 0 : i32
    %c0_i32_1 = arith.constant 0 : i32
    return %c0_i32, %c0_i32_0 : i32, i32
  }
  func.func @transform_26(%arg0: i32) -> (i32, i32) {
    %c0_i32 = arith.constant 0 : i32
    %c0_i32_0 = arith.constant 0 : i32
    %c0_i32_1 = arith.constant 0 : i32
    return %c0_i32, %c0_i32_0 : i32, i32
  }
  func.func @transform_27(%arg0: i32) -> (i32, i32, i32) {
    %c0_i32 = arith.constant 0 : i32
    %c0_i32_0 = arith.constant 0 : i32
    %c0_i32_1 = arith.constant 0 : i32
    return %arg0, %c0_i32, %c0_i32_0 : i32, i32, i32
  }
}

</mosaic_0001>

<bundles_post_ra>
// kernel: tpu_custom_call.1
= control target key start
LH: loop header
LB: loop body
LE: loop exit
PB: predicated region body
PF: predicated region fallthrough
CT: control target
= control target key end

     0   :  { %s4991_s0 = inlined_call_operand.vmem [shape: f32[2,8,32], index: 0, kind: input, shape index: {}]   ;;  %s4992_s1 = inlined_call_operand.vmem [shape: f32[128,32], index: 1, kind: input, shape index: {}]   ;;  %s4993_s2 = inlined_call_operand.vmem [shape: f32[4,64], index: 2, kind: input, shape index: {}]   ;;  %s4994_s3 = inlined_call_operand.vmem [shape: f32[1,64], index: 3, kind: input, shape index: {}]   ;;  %s4995_s4 = inlined_call_operand.vmem [shape: f32[8,64], index: 4, kind: input, shape index: {}]   ;;  %s4996_s5 = inlined_call_operand.vmem [shape: f32[64,64], index: 5, kind: input, shape index: {}]   ;;  %s4997_s6 = inlined_call_operand.vmem [shape: f32[1,64], index: 6, kind: input, shape index: {}]   ;;  %s4998_s7 = inlined_call_operand.vmem [shape: f32[4,64], index: 7, kind: input, shape index: {}]   ;;  %s4999_s8 = inlined_call_operand.vmem [shape: f32[1,64], index: 8, kind: input, shape index: {}]   ;;  %s5000_s9 = inlined_call_operand.vmem [shape: f32[32,64], index: 9, kind: input, shape index: {}]   ;;  %s5001_s10 = inlined_call_operand.vmem [shape: f32[1,32], index: 10, kind: input, shape index: {}]   ;;  %s5002_s11 = inlined_call_operand.vmem [shape: f32[1,32], index: 11, kind: input, shape index: {}]   ;;  %s5003_s12 = inlined_call_operand.vmem [shape: f32[1,32], index: 12, kind: input, shape index: {}]   ;;  %s5004_s13 = inlined_call_operand.vmem [shape: f32[1,32], index: 13, kind: input, shape index: {}]   ;;  %s5005_s14 = inlined_call_operand.vmem [shape: f32[128,32], index: 14, kind: input, shape index: {}]   ;;  %s5006_s15 = inlined_call_operand.vmem [shape: f32[4,64], index: 15, kind: input, shape index: {}]   ;;  %s5007_s16 = inlined_call_operand.vmem [shape: f32[1,64], index: 16, kind: input, shape index: {}]   ;;  %s5008_s17 = inlined_call_operand.vmem [shape: f32[8,64], index: 17, kind: input, shape index: {}]   ;;  %s5009_s18 = inlined_call_operand.vmem [shape: f32[64,64], index: 18, kind: input, shape index: {}]   ;;  %s5010_s19 = inlined_call_operand.vmem [shape: f32[1,64], index: 19, kind: input, shape index: {}]   ;;  %s5011_s20 = inlined_call_operand.vmem [shape: f32[4,64], index: 20, kind: input, shape index: {}]   ;;  %s5012_s21 = inlined_call_operand.vmem [shape: f32[1,64], index: 21, kind: input, shape index: {}]   ;;  %s5013_s22 = inlined_call_operand.vmem [shape: f32[32,64], index: 22, kind: input, shape index: {}]   ;;  %s5014_s23 = inlined_call_operand.vmem [shape: f32[1,32], index: 23, kind: input, shape index: {}]   ;;  %s5015_s24 = inlined_call_operand.vmem [shape: f32[1,32], index: 24, kind: input, shape index: {}]   ;;  %s5016_s25 = inlined_call_operand.vmem [shape: f32[1,32], index: 25, kind: input, shape index: {}]   ;;  %s5017_s26 = inlined_call_operand.vmem [shape: f32[1,32], index: 26, kind: input, shape index: {}]   ;;  %s5018_s27 = inlined_call_operand.hbm [shape: f32[2,8,32], index: 27, kind: output, shape index: {}]  }
   0x1   :  { %5031 = sst [smem:[#allocation9_spill]] %s4991_s0 }
   0x2   :  { %5032 = sst [smem:[#allocation10_spill]] %s4992_s1 }
   0x3   :  { %5033 = sst [smem:[#allocation11_spill]] %s4993_s2 }
   0x4   :  { %5034 = sst [smem:[#allocation12_spill]] %s4994_s3 }
   0x5   :  { %5035 = sst [smem:[#allocation13_spill]] %s4995_s4 }
   0x6   :  { %5036 = sst [smem:[#allocation14_spill]] %s4996_s5 }
   0x7   :  { %5037 = sst [smem:[#allocation15_spill]] %s4997_s6 }
   0x8   :  { %5038 = sst [smem:[#allocation16_spill]] %s4998_s7 }
   0x9   :  { %5039 = sst [smem:[#allocation17_spill]] %s4999_s8 }
   0xa   :  { %5040 = sst [smem:[#allocation18_spill]] %s5000_s9 }
   0xb   :  { %5041 = sst [smem:[#allocation19_spill]] %s5001_s10 }
   0xc   :  { %5042 = sst [smem:[#allocation20_spill]] %s5002_s11 }
   0xd   :  { %5043 = sst [smem:[#allocation21_spill]] %s5003_s12 }
   0xe   :  { %5044 = sst [smem:[#allocation22_spill]] %s5004_s13 }
   0xf   :  { %32 = vsyncpa [#allocation3], 0 }
  0x10   :  { %34 = vsyncpa [#allocation3 + $0x1], 0  ;;  %s3776_s7 = smov 0   ;;  %s3778_s4 = smov 0  }
  0x11   :  { %s3780_s8 = smov 0   ;;  %s3782_s30 = smov 0  }
  0x12 LB: > { %5045 = sst [smem:[#allocation5_spill]] %s3621_s8  ;;  %s3797_s9 = sadd.s32 4294967295, %s3625_s30   ;;  %s3625_s30 = sphi %s3782_s30, %s5067_s30   ;;  %s3621_s8 = sphi %s3780_s8, %s5069_s8   ;;  %s3617_s4 = sphi %s3778_s4, %s5071_s4   ;;  %s3613_s7 = sphi %s3776_s7, %s5070_s7  }
  0x13   : > { %s3439_s5 = sadd.s32 4294967294, %s3625_s30   ;;  %s3801_s28 = sadd.s32 1, %s3625_s30  }
  0x14   : > { %5046 = sst [smem:[#allocation6_spill]] %s3801_s28  ;;  %s619_s0 = sadd.s32 1, %s3621_s8 }
  0x15   : > { %s616_s10 = ssub.s32 %s3625_s30, %s3801_s28  ;;  %p629_p0 = scmp.ne.s32.totalorder %s3621_s8, %s3617_s4 }
  0x16   : > { %p617_p1 = scmp.eq.s32.totalorder %s616_s10, 0  ;;  %p630_p2 = scmp.eq.s32.totalorder %s3797_s9, 1 }
  0x17   : > { %p635_p3 = scmp.ne.s32.totalorder %s3617_s4, %s3613_s7  ;;  %p636_p4 = scmp.eq.s32.totalorder %s3439_s5, 1 }
  0x18   : > { %s3812_s29 = scalar_select %p617_p1, %s3621_s8, %s619_s0  }
  0x19   : > { %p3814_p5 = por %p630_p2, %p629_p0  ;;  %p3818_p6 = por %p636_p4, %p635_p3 }
  0x1a   : > { %5047 = sst [smem:[#allocation7_spill]] %s3812_s29  ;;  %p3442_p7 = scmp.ge.s32.totalorder %s3625_s30, 1 }
  0x1b   : > { %s5049_s6 = scalar_select %p3818_p6, 1, 0 }
  0x1c   : > { %p739_p8 = scmp.lt.s32.totalorder %s3625_s30, 3 }
  0x1d   : > { %5050 = sst [smem:[#allocation8_spill]] %s5049_s6 }
  0x1e   : > { %p740_p9 = pnand %p3442_p7, %p739_p8 }
  0x1f   : > { %s5051_s3 = sld [smem:[#allocation10_spill]] (!%p740_p9)  ;;  %p810_p10 = scmp.lt.s32.totalorder (!%p740_p9), %s3797_s9, 1 }
  0x20   : > { %743 = sbr.rel (%p740_p9) target bundleno = 1894 (0x766), region = 128  ;;  %s5052_s29 = sld [smem:[#allocation9_spill]] (!%p740_p9) }
  0x21   : > { %s5054_s28 = sld [smem:[#allocation13_spill]] (!%p740_p9)  ;;  %s3446_s6 = sshll.u32 (!%p740_p9), %s3797_s9, 3 }
  0x22   : > { %s5055_s10 = sld [smem:[#allocation11_spill]] (!%p740_p9) }
  0x23   : > { %s5056_s0 = sld [smem:[#allocation12_spill]] (!%p740_p9) }
  0x24   : > { %s5057_s8 = sld [smem:[#allocation15_spill]] (!%p740_p9) }
  0x25   : > { %v830_v0 = vld [vmem:[%s5051_s3 + $0x78] sm:$0xff]  ;;  %vm853_vm0 = vcmask 261120   ;;  %v829_v1 = vld [vmem:[%s5051_s3 + $0x70] sm:$0xff]  ;;  %v828_v2 = vld [vmem:[%s5051_s3 + $0x68] sm:$0xff]  ;;  %s811_s11 = scalar_select %p810_p10, %s3797_s9, 1  ;;  %vm1280_vm1 = vcmask 523264  }
  0x26   : > { %v903_v3 = vsel %vm853_vm0, %v830_v0, 0  ;;  %v900_v4 = vsel %vm853_vm0, %v829_v1, 0  ;;  %v897_v5 = vsel %vm853_vm0, %v828_v2, 0  ;;  %v827_v6 = vld [vmem:[%s5051_s3 + $0x60] sm:$0xff]  ;;  %v826_v7 = vld [vmem:[%s5051_s3 + $0x58] sm:$0xff]  ;;  %v825_v17 = vld [vmem:[%s5051_s3 + $0x50] sm:$0xff] }
  0x27   : > { %v3842_v8 = vand.u32 4294901760, %v903_v3  ;;  %v3844_v9 = vand.u32 4294901760, %v900_v4  ;;  %v3846_v10 = vand.u32 4294901760, %v897_v5  ;;  %v894_v11 = vsel %vm853_vm0, %v827_v6, 0  ;;  %v824_v26 = vld [vmem:[%s5051_s3 + $0x48] sm:$0xff]  ;;  %v823_v34 = vld [vmem:[%s5051_s3 + $0x40] sm:$0xff] }
  0x28   : > { %v3849_v12 = vand.u32 4294901760, %v894_v11  ;;  %v891_v16 = vsel %vm853_vm0, %v826_v7, 0  ;;  %v888_v21 = vsel %vm853_vm0, %v825_v17, 0  ;;  %v885_v29 = vsel %vm853_vm0, %v824_v26, 0  ;;  %v822_v41 = vld [vmem:[%s5051_s3 + $0x38] sm:$0xff]  ;;  %v821_v48 = vld [vmem:[%s5051_s3 + $0x30] sm:$0xff] }
  0x29   : > { %906 = vmatpush.xpose.msra.mxu0 %v3842_v8  ;;  %v3853_v13 = vsub.f32 %v903_v3, %v3842_v8  ;;  %v3856_v14 = vsub.f32 %v900_v4, %v3844_v9  ;;  %v3859_v15 = vsub.f32 %v897_v5, %v3846_v10  ;;  %1102 = vmatpush.xpose.msra.mxu3 %v3842_v8  ;;  %v3869_v20 = vand.u32 4294901760, %v891_v16  ;;  %v820_v54 = vld [vmem:[%s5051_s3 + $0x28] sm:$0xff]  ;;  %v819_v62 = vld [vmem:[%s5051_s3 + $0x20] sm:$0xff]  ;;  %v818_v5 = vld [vmem:[%s5051_s3 + $0x18] sm:$0xff]  ;;  %s3444_s2 = sshll.u32 %s811_s11, 3  ;;  %s5053_s11 = sld [smem:[#allocation14_spill]] }
  0x2a   : > { %v3881_v25 = vsub.f32 %v894_v11, %v3849_v12  ;;  %v3888_v28 = vand.u32 4294901760, %v888_v21  ;;  %v3904_v35 = vand.u32 4294901760, %v885_v29  ;;  %v882_v40 = vsel %vm853_vm0, %v823_v34, 0  ;;  %v816_v34 = vld [vmem:[%s5051_s3 + $0x8] sm:$0xff]  ;;  %s4091_s5 = scalar_lea.vmem %s5052_s29, %s3444_s2  ;;  %s5060_s2 = sld [smem:[#allocation17_spill]] }
  0x2b   : > { %v948_v18 = vand.u32 4294901760, %v3853_v13  ;;  %v954_v19 = vand.u32 4294901760, %v3856_v14  ;;  %1049 = vmatpush.xpose.msra.mxu2 %v3853_v13  ;;  %v960_v24 = vand.u32 4294901760, %v3859_v15  ;;  %v3897_v33 = vsub.f32 %v891_v16, %v3869_v20  ;;  %s5061_s13 = sld [smem:[#allocation22_spill]] }
  0x2c   : > { %v966_v32 = vand.u32 4294901760, %v3881_v25  ;;  %v3912_v39 = vsub.f32 %v888_v21, %v3888_v28  ;;  %v3921_v42 = vsub.f32 %v885_v29, %v3904_v35  ;;  %v3928_v46 = vand.u32 4294901760, %v882_v40  ;;  %s5062_s12 = sld [smem:[#allocation21_spill]] }
  0x2d   : > { %908 = vmatpush.xpose.msra.mxu0 %v3844_v9  ;;  %v949_v22 = vsub.f32 %v3853_v13, %v948_v18  ;;  %v955_v23 = vsub.f32 %v3856_v14, %v954_v19  ;;  %1104 = vmatpush.xpose.msra.mxu3 %v3844_v9  ;;  %v961_v31 = vsub.f32 %v3859_v15, %v960_v24  ;;  %v972_v38 = vand.u32 4294901760, %v3897_v33  ;;  %v814_v13 = vld [vmem:[%s4091_s5] sm:$0xff]  ;;  %s5064_s29 = sld [smem:[#allocation20_spill]] }
  0x2e   : > { %v967_v37 = vsub.f32 %v3881_v25, %v966_v32  ;;  %v978_v45 = vand.u32 4294901760, %v3912_v39  ;;  %v879_v47 = vsel %vm853_vm0, %v822_v41, 0  ;;  %v984_v49 = vand.u32 4294901760, %v3921_v42 }
  0x2f   : > { %v950_v27 = vand.u32 4294901760, %v949_v22  ;;  %1052 = vmatpush.xpose.msra.mxu2 %v3856_v14  ;;  %v956_v30 = vand.u32 4294901760, %v955_v23  ;;  %v962_v36 = vand.u32 4294901760, %v961_v31  ;;  %v973_v44 = vsub.f32 %v3897_v33, %v972_v38  ;;  %v817_v22 = vld [vmem:[%s5051_s3 + $0x10] sm:$0xff] }
  0x30   : > { %v968_v43 = vand.u32 4294901760, %v967_v37  ;;  %v979_v51 = vsub.f32 %v3912_v39, %v978_v45  ;;  %v3941_v52 = vand.u32 4294901760, %v879_v47  ;;  %v3944_v53 = vsub.f32 %v882_v40, %v3928_v46 }
  0x31   : > { %951 = vmatpush.xpose.msra.mxu1 %v950_v27  ;;  %910 = vmatpush.xpose.msra.mxu0 %v3846_v10  ;;  %v974_v50 = vand.u32 4294901760, %v973_v44  ;;  %v876_v55 = vsel %vm853_vm0, %v821_v48, 0  ;;  %v985_v56 = vsub.f32 %v3921_v42, %v984_v49  ;;  %v873_v57 = vsel %vm853_vm0, %v820_v54, 0 }
  0x32   : > { %1106 = vmatpush.xpose.msra.mxu3 %v3846_v10  ;;  %v980_v58 = vand.u32 4294901760, %v979_v51  ;;  %v990_v59 = vand.u32 4294901760, %v3944_v53  ;;  %v3958_v60 = vand.u32 4294901760, %v876_v55  ;;  %v3961_v61 = vsub.f32 %v879_v47, %v3941_v52  ;;  %v815_v47 = vld [vmem:[%s5051_s3] sm:$0xff] }
  0x33   : > { %1055 = vmatpush.xpose.msra.mxu2 %v3859_v15  ;;  %v986_v63 = vand.u32 4294901760, %v985_v56  ;;  %v3968_v0 = vand.u32 4294901760, %v873_v57  ;;  %v870_v4 = vsel %vm853_vm0, %v819_v62, 0  ;;  %v867_v21 = vsel %vm853_vm0, %v818_v5, 0 }
  0x34   : > { %v991_v1 = vsub.f32 %v3944_v53, %v990_v59  ;;  %v996_v2 = vand.u32 4294901760, %v3961_v61  ;;  %v3976_v3 = vsub.f32 %v876_v55, %v3958_v60  ;;  %v3984_v6 = vand.u32 4294901760, %v870_v4 }
  0x35   : > { %957 = vmatpush.xpose.msra.mxu1 %v956_v30  ;;  %912 = vmatpush.xpose.msra.mxu0 %v3849_v12  ;;  %v3992_v17 = vsub.f32 %v873_v57, %v3968_v0  ;;  %v4008_v30 = vand.u32 4294901760, %v867_v21  ;;  %v864_v31 = vsel %vm853_vm0, %v817_v22, 0  ;;  %v861_v44 = vsel %vm853_vm0, %v816_v34, 0 }
  0x36   : > { %1108 = vmatpush.xpose.msra.mxu3 %v3849_v12  ;;  %v992_v7 = vand.u32 4294901760, %v991_v1  ;;  %v997_v11 = vsub.f32 %v3961_v61, %v996_v2  ;;  %v1002_v16 = vand.u32 4294901760, %v3976_v3  ;;  %v4001_v23 = vsub.f32 %v870_v4, %v3984_v6 }
  0x37   : > { %1058 = vmatpush.xpose.msra.mxu2 %v3881_v25  ;;  %v1008_v29 = vand.u32 4294901760, %v3992_v17  ;;  %v4021_v41 = vand.u32 4294901760, %v864_v31  ;;  %v4037_v54 = vand.u32 4294901760, %v861_v44  ;;  %v858_v56 = vsel %vm853_vm0, %v815_v47, 0  ;;  %v835_v47 = vld [vmem:[%s5053_s11 + $0x8] sm:$0xff] }
  0x38   : > { %v998_v26 = vand.u32 4294901760, %v997_v11  ;;  %v1003_v27 = vsub.f32 %v3976_v3, %v1002_v16  ;;  %vm1255_vm2 = vcmask 1040384   ;;  %vm1262_vm3 = vcmask 1041408  }
  0x39   : > { %963 = vmatpush.xpose.msra.mxu1 %v962_v36  ;;  %914 = vmatpush.xpose.msra.mxu0 %v3869_v20  ;;  %v1014_v36 = vand.u32 4294901760, %v4001_v23  ;;  %v1009_v40 = vsub.f32 %v3992_v17, %v1008_v29  ;;  %v4040_v55 = vsub.f32 %v864_v31, %v4021_v41  ;;  %v4053_v1 = vsub.f32 %v861_v44, %v4037_v54 }
  0x3a   : > { %1110 = vmatpush.xpose.msra.mxu3 %v3869_v20  ;;  %v1004_v37 = vand.u32 4294901760, %v1003_v27  ;;  %vm1269_vm4 = vcmask 1042432   ;;  %vm1810_vm5 = vcmask 1043456  }
  0x3b   : > { %1061 = vmatpush.xpose.msra.mxu2 %v3897_v33  ;;  %v1015_v48 = vsub.f32 %v4001_v23, %v1014_v36  ;;  %v1026_v62 = vand.u32 4294901760, %v4040_v55 }
  0x3d   : > { %969 = vmatpush.xpose.msra.mxu1 %v968_v43  ;;  %916 = vmatpush.xpose.msra.mxu0 %v3888_v28  ;;  %v4024_v43 = vsub.f32 %v867_v21, %v4008_v30  ;;  %v1016_v57 = vand.u32 4294901760, %v1015_v48  ;;  %v1027_v5 = vsub.f32 %v4040_v55, %v1026_v62  ;;  %v833_v48 = vld [vmem:[%s5054_s28] sm:$0xff]  ;;  %s5059_s28 = sld [smem:[#allocation18_spill]] }
  0x3e   : > { %1112 = vmatpush.xpose.msra.mxu3 %v3888_v28 }
  0x3f   : > { %1064 = vmatpush.xpose.msra.mxu2 %v3912_v39  ;;  %v1020_v51 = vand.u32 4294901760, %v4024_v43  ;;  %v1028_v21 = vand.u32 4294901760, %v1027_v5 }
  0x41   : > { %975 = vmatpush.xpose.msra.mxu1 %v974_v50  ;;  %918 = vmatpush.xpose.msra.mxu0 %v3904_v35  ;;  %v1010_v50 = vand.u32 4294901760, %v1009_v40 }
  0x42   : > { %1114 = vmatpush.xpose.msra.mxu3 %v3904_v35 }
  0x43   : > { %1067 = vmatpush.xpose.msra.mxu2 %v3921_v42 }
  0x45   : > { %981 = vmatpush.xpose.msra.mxu1 %v980_v58  ;;  %920 = vmatpush.xpose.msra.mxu0 %v3928_v46  ;;  %v1021_v58 = vsub.f32 %v4024_v43, %v1020_v51 }
  0x46   : > { %1116 = vmatpush.xpose.msra.mxu3 %v3928_v46 }
  0x47   : > { %1070 = vmatpush.xpose.msra.mxu2 %v3944_v53  ;;  %v1022_v4 = vand.u32 4294901760, %v1021_v58 }
  0x49   : > { %987 = vmatpush.xpose.msra.mxu1 %v986_v63  ;;  %922 = vmatpush.xpose.msra.mxu0 %v3941_v52  ;;  %v4050_v63 = vand.u32 4294901760, %v858_v56 }
  0x4a   : > { %1118 = vmatpush.xpose.msra.mxu3 %v3941_v52 }
  0x4b   : > { %1073 = vmatpush.xpose.msra.mxu2 %v3961_v61  ;;  %v4063_v11 = vsub.f32 %v858_v56, %v4050_v63 }
  0x4d   : > { %993 = vmatpush.xpose.msra.mxu1 %v992_v7  ;;  %924 = vmatpush.xpose.msra.mxu0 %v3958_v60  ;;  %v1032_v7 = vand.u32 4294901760, %v4053_v1 }
  0x4e   : > { %1120 = vmatpush.xpose.msra.mxu3 %v3958_v60 }
  0x4f   : > { %1076 = vmatpush.xpose.msra.mxu2 %v3976_v3  ;;  %v1033_v22 = vsub.f32 %v4053_v1, %v1032_v7 }
  0x51   : > { %999 = vmatpush.xpose.msra.mxu1 %v998_v26  ;;  %926 = vmatpush.xpose.msra.mxu0 %v3968_v0  ;;  %v1038_v26 = vand.u32 4294901760, %v4063_v11  ;;  %v1034_v27 = vand.u32 4294901760, %v1033_v22 }
  0x52   : > { %1122 = vmatpush.xpose.msra.mxu3 %v3968_v0 }
  0x53   : > { %1079 = vmatpush.xpose.msra.mxu2 %v3992_v17  ;;  %v1039_v31 = vsub.f32 %v4063_v11, %v1038_v26 }
  0x55   : > { %1005 = vmatpush.xpose.msra.mxu1 %v1004_v37  ;;  %928 = vmatpush.xpose.msra.mxu0 %v3984_v6  ;;  %v1040_v34 = vand.u32 4294901760, %v1039_v31 }
  0x56   : > { %1124 = vmatpush.xpose.msra.mxu3 %v3984_v6 }
  0x57   : > { %1082 = vmatpush.xpose.msra.mxu2 %v4001_v23 }
  0x59   : > { %1011 = vmatpush.xpose.msra.mxu1 %v1010_v50  ;;  %930 = vmatpush.xpose.msra.mxu0 %v4008_v30  ;;  %v1440_v50 = vsel %vm1280_vm1, %v835_v47, 0 }
  0x5a   : > { %1126 = vmatpush.xpose.msra.mxu3 %v4008_v30 }
  0x5b   : > { %1085 = vmatpush.xpose.msra.mxu2 %v4024_v43 }
  0x5d   : > { %1017 = vmatpush.xpose.msra.mxu1 %v1016_v57  ;;  %932 = vmatpush.xpose.msra.mxu0 %v4021_v41 }
  0x5e   : > { %1128 = vmatpush.xpose.msra.mxu3 %v4021_v41 }
  0x5f   : > { %1088 = vmatpush.xpose.msra.mxu2 %v4040_v55  ;;  %v4213_v55 = vand.u32 4294901760, %v1440_v50 }
  0x61   : > { %1023 = vmatpush.xpose.msra.mxu1 %v1022_v4  ;;  %934 = vmatpush.xpose.msra.mxu0 %v4037_v54  ;;  %v834_v4 = vld [vmem:[%s5053_s11] sm:$0xff] }
  0x62   : > { %1130 = vmatpush.xpose.msra.mxu3 %v4037_v54  ;;  %v1437_v5 = vsel %vm1280_vm1, %v834_v4, 0 }
  0x63   : > { %1091 = vmatpush.xpose.msra.mxu2 %v4053_v1 }
  0x65   : > { %1029 = vmatpush.xpose.msra.mxu1 %v1028_v21  ;;  %936 = vmatpush.xpose.msra.mxu0 %v4050_v63  ;;  %v4232_v21 = vand.u32 4294901760, %v1437_v5 }
  0x66   : > { %1132 = vmatpush.xpose.msra.mxu3 %v4050_v63 }
  0x67   : > { %1094 = vmatpush.xpose.msra.mxu2 %v4063_v11 }
  0x69   : > { %1143 = vmatpush.xpose.msrb.mxu0 %v948_v18  ;;  %1035 = vmatpush.xpose.msra.mxu1 %v1034_v27 }
  0x6d   : > { %1147 = vmatpush.xpose.msrb.mxu0 %v954_v19  ;;  %1041 = vmatpush.xpose.msra.mxu1 %v1040_v34  ;;  %v4237_v34 = vsub.f32 %v1437_v5, %v4232_v21 }
  0x71   : > { %1210 = vmatpush.xpose.msrb.mxu1 %v3842_v8  ;;  %1151 = vmatpush.xpose.msrb.mxu0 %v960_v24  ;;  %v855_v8 = vsel %vm853_vm0, %v814_v13, 0  ;;  %v840_v24 = vld [vmem:[%s5053_s11 + $0x30] sm:$0xff] }
  0x72   : > { %v937_v14 = vand.u32 4294901760, %v855_v8 }
  0x74   : > { %v938_v15 = vsub.f32 %v855_v8, %v937_v14  ;;  %1043 = vmatmul.f32.vlgmr.msra.gmra.mxu1 %v937_v14  ;;  %v3514_v8 = vld [vmem:[%s5056_s0] ss:$0 sm:$0xff]  ;;  %s5058_s0 = sld [smem:[#allocation16_spill]] }
  0x75   : > { %1212 = vmatpush.xpose.msrb.mxu1 %v3844_v9  ;;  %1155 = vmatpush.xpose.msrb.mxu0 %v966_v32 }
  0x76   : > { %1097 = vmatmul.f32.vlgmr.msra.gmra.mxu2 %v938_v15  ;;  %v939_v9 = vand.u32 4294901760, %v938_v15 }
  0x78   : > { %v940_v18 = vsub.f32 %v938_v15, %v939_v9  ;;  %1136 = vmatmul.f32.vlgmr.msra.gmra.mxu3 %v939_v9  ;;  %v1545_v9 = vand.u32 4294901760, %v4237_v34 }
  0x79   : > { %1214 = vmatpush.xpose.msrb.mxu1 %v3846_v10  ;;  %1159 = vmatpush.xpose.msrb.mxu0 %v972_v38  ;;  %v839_v38 = vld [vmem:[%s5053_s11 + $0x28] sm:$0xff] }
  0x7a   : > { %v941_v10 = vand.u32 4294901760, %v940_v18  ;;  %v1452_v39 = vsel %vm1280_vm1, %v839_v38, 0 }
  0x7c   : > { %942 = vmatmul.f32.vlgmr.msra.gmra.mxu0 %v941_v10 }
  0x7d   : > { %1216 = vmatpush.xpose.msrb.mxu1 %v3849_v12  ;;  %1163 = vmatpush.xpose.msrb.mxu0 %v978_v45  ;;  %v841_v12 = vld [vmem:[%s5053_s11 + $0x38] sm:$0xff]  ;;  %v4157_v45 = vand.u32 4294901760, %v1452_v39 }
  0x7e   : > { %v1458_v19 = vsel %vm1280_vm1, %v841_v12, 0 }
  0x81   : > { %1218 = vmatpush.xpose.msrb.mxu1 %v3869_v20  ;;  %1167 = vmatpush.xpose.msrb.mxu0 %v984_v49  ;;  %v4133_v20 = vand.u32 4294901760, %v1458_v19  ;;  %v838_v49 = vld [vmem:[%s5053_s11 + $0x20] sm:$0xff] }
  0x83   : > { %v4140_v25 = vsub.f32 %v1458_v19, %v4133_v20 }
  0x85   : > { %1220 = vmatpush.xpose.msrb.mxu1 %v3888_v28  ;;  %1171 = vmatpush.xpose.msrb.mxu0 %v990_v59  ;;  %v1455_v28 = vsel %vm1280_vm1, %v840_v24, 0  ;;  %v1503_v33 = vand.u32 4294901760, %v4140_v25 }
  0x86   : > { %v4143_v32 = vand.u32 4294901760, %v1455_v28 }
  0x89   : > { %1222 = vmatpush.xpose.msrb.mxu1 %v3904_v35  ;;  %1175 = vmatpush.xpose.msrb.mxu0 %v996_v2  ;;  %v4147_v35 = vsub.f32 %v1455_v28, %v4143_v32 }
  0x8b   : > { %v1509_v42 = vand.u32 4294901760, %v4147_v35 }
  0x8d   : > { %1224 = vmatpush.xpose.msrb.mxu1 %v3928_v46  ;;  %1179 = vmatpush.xpose.msrb.mxu0 %v1002_v16  ;;  %v4160_v46 = vsub.f32 %v1452_v39, %v4157_v45  ;;  %v1510_v5 = vsub.f32 %v4147_v35, %v1509_v42 }
  0x8f   : > { %v1515_v53 = vand.u32 4294901760, %v4160_v46 }
  0x91   : > { %1226 = vmatpush.xpose.msrb.mxu1 %v3941_v52  ;;  %1183 = vmatpush.xpose.msrb.mxu0 %v1008_v29  ;;  %v1449_v52 = vsel %vm1280_vm1, %v838_v49, 0 }
  0x92   : > { %v4170_v59 = vand.u32 4294901760, %v1449_v52 }
  0x94   : > { %v4173_v61 = vsub.f32 %v1449_v52, %v4170_v59 }
  0x95   : > { %1228 = vmatpush.xpose.msrb.mxu1 %v3958_v60  ;;  %1187 = vmatpush.xpose.msrb.mxu0 %v1014_v36 }
  0x99   : > { %1230 = vmatpush.xpose.msrb.mxu1 %v3968_v0  ;;  %1191 = vmatpush.xpose.msrb.mxu0 %v1020_v51  ;;  %v837_v0 = vld [vmem:[%s5053_s11 + $0x18] sm:$0xff]  ;;  %v1285_v51 = vsel %vm1280_vm1, %v833_v48, 0 }
  0x9a   : > { %v1446_v2 = vsel %vm1280_vm1, %v837_v0, 0  ;;  %v1302_v56 = vand.u32 4294901760, %v1285_v51 }
  0x9b   : > { %v4183_v16 = vand.u32 4294901760, %v1446_v2 }
  0x9c   : > { %v4222_v1 = vsub.f32 %v1285_v51, %v1302_v56  ;;  %1303 = vmatpush.xpose.msrb.mxu2 %v1302_v56 }
  0x9d   : > { %1232 = vmatpush.xpose.msrb.mxu1 %v3984_v6  ;;  %1195 = vmatpush.xpose.msrb.mxu0 %v1026_v62  ;;  %v1521_v6 = vand.u32 4294901760, %v4173_v61  ;;  %v4186_v29 = vsub.f32 %v1446_v2, %v4183_v16  ;;  %v831_v62 = vld [vmem:[%s5055_s10] sm:$0xf]  ;;  %s5025_s10 = smov 64  }
  0x9e   : > { %v1330_v11 = vand.u32 4294901760, %v4222_v1  ;;  %v1264_v24 = vperm.slane %v831_v62, 1  ;;  %v1271_v52 = vperm.slane %v831_v62, 0 }
  0x9f   : > { %v1527_v37 = vand.u32 4294901760, %v4186_v29 }
  0xa0   : > { %1356 = vmatpush.xpose.msra.mxu2 %v4222_v1  ;;  %v1331_v31 = vsub.f32 %v4222_v1, %v1330_v11 }
  0xa1   : > { %1234 = vmatpush.xpose.msrb.mxu1 %v4008_v30  ;;  %1199 = vmatpush.xpose.msrb.mxu0 %v1032_v7  ;;  %v836_v30 = vld [vmem:[%s5053_s11 + $0x10] sm:$0xff] }
  0xa2   : > { %v1443_v36 = vsel %vm1280_vm1, %v836_v30, 0  ;;  %v1332_v15 = vand.u32 4294901760, %v1331_v31 }
  0xa3   : > { %v4196_v40 = vand.u32 4294901760, %v1443_v36 }
  0xa4   : > { %1333 = vmatpush.xpose.msrb.mxu3 %v1332_v15 }
  0xa5   : > { %1236 = vmatpush.xpose.msrb.mxu1 %v4021_v41  ;;  %1203 = vmatpush.xpose.msrb.mxu0 %v1038_v26  ;;  %v4199_v44 = vsub.f32 %v1443_v36, %v4196_v40  ;;  %v1246_v26 = vperm.slane %v831_v62, 3 }
  0xa8   : > { %1205 = vmatmul.f32.vlgmr.msrb.gmra.mxu0 %v937_v14  ;;  %1379 = vmatpush.xpose.msra.mxu3 %v1302_v56 }
  0xa9   : > { %1238 = vmatpush.xpose.msrb.mxu1 %v4037_v54  ;;  %1634 = vmatpush.xpose.msra.mxu0 %v1503_v33  ;;  %v1533_v54 = vand.u32 4294901760, %v4199_v44 }
  0xab   : > { %v1534_v31 = vsub.f32 %v4199_v44, %v1533_v54 }
  0xad   : > { %1240 = vmatpush.xpose.msrb.mxu1 %v4050_v63  ;;  %1638 = vmatpush.xpose.msra.mxu0 %v1509_v42  ;;  %v4219_v63 = vsub.f32 %v1440_v50, %v4213_v55 }
  0xaf   : > { %v1539_v7 = vand.u32 4294901760, %v4219_v63 }
  0xb0   : > { %1242 = vmatmul.f32.vlgmr.msrb.gmra.mxu1 %v937_v14  ;;  %v1257_v14 = vperm.slane %v831_v62, 2 }
  0xb1   : > { %1677 = vmatpush.xpose.msra.mxu1 %v4133_v20  ;;  %1642 = vmatpush.xpose.msra.mxu0 %v1515_v53 }
  0xb5   : > { %1679 = vmatpush.xpose.msra.mxu1 %v4143_v32  ;;  %1646 = vmatpush.xpose.msra.mxu0 %v1521_v6 }
  0xb9   : > { %1681 = vmatpush.xpose.msra.mxu1 %v4157_v45  ;;  %1650 = vmatpush.xpose.msra.mxu0 %v1527_v37 }
  0xbd   : > { %1683 = vmatpush.xpose.msra.mxu1 %v4170_v59  ;;  %1654 = vmatpush.xpose.msra.mxu0 %v1533_v54 }
  0xc1   : > { %1685 = vmatpush.xpose.msra.mxu1 %v4183_v16  ;;  %1658 = vmatpush.xpose.msra.mxu0 %v1539_v7 }
  0xc5   : > { %1687 = vmatpush.xpose.msra.mxu1 %v4196_v40  ;;  %1662 = vmatpush.xpose.msra.mxu0 %v1545_v9 }
  0xc9   : > { %1689 = vmatpush.xpose.msra.mxu1 %v4213_v55 }
  0xcd   : > { %1691 = vmatpush.xpose.msra.mxu1 %v4232_v21 }
  0xf1   : > { %v1044_v60 = vpop.f32.mrf.mxu1 }
  0xf9   : > { %v943_v3 = vpop.f32.mrf.mxu0  ;;  %v1098_v23 = vpop.f32.mrf.mxu2 }
  0xfa   : > { %v1045_v17 = vadd.f32 %v1044_v60, %v943_v3 }
  0xfb   : > { %v1137_v43 = vpop.f32.mrf.mxu3 }
  0xfc   : > { %v1099_v41 = vadd.f32 %v1098_v23, %v1045_v17 }
  0xfe   : > { %v1138_v57 = vadd.f32 %v1137_v43, %v1099_v41 }
 0x125   : > { %v1206_v58 = vpop.f32.mrf.mxu0 }
 0x126   : > { %v1207_v22 = vadd.f32 %v1206_v58, %v1138_v57  ;;  %v1504_v58 = vsub.f32 %v4140_v25, %v1503_v33  ;;  %v1522_v33 = vsub.f32 %v4173_v61, %v1521_v6  ;;  %v1535_v6 = vand.u32 4294901760, %v1534_v31 }
 0x128   : > { %v1505_v4 = vand.u32 4294901760, %v1504_v58  ;;  %v1523_v42 = vand.u32 4294901760, %v1522_v33 }
 0x12d   : > { %v1243_v27 = vpop.f32.mrf.mxu1 }
 0x12e   : > { %v4240_v13 = vadd.f32 %v1243_v27, %v1207_v22 }
 0x130   : > { %v1247_v18 = vmul.f32 %v1246_v26, %v4240_v13  ;;  %v1253_v10 = vrot.slane %v4240_v13, 7  ;;  %v1260_v12 = vrot.slane %v4240_v13, 6  ;;  %v1267_v19 = vrot.slane %v4240_v13, 5 }
 0x131   : > { %v1511_v26 = vand.u32 4294901760, %v1510_v5  ;;  %v3633_v5 = vmov 4  }
 0x132   : > { %v1251_v28 = vadd.f32 %v3514_v8, %v1247_v18  ;;  %v1256_v38 = vsel %vm1255_vm2, 0.0, %v1253_v10  ;;  %v1263_v39 = vsel %vm1262_vm3, 0.0, %v1260_v12  ;;  %v1270_v60 = vsel %vm1269_vm4, 0.0, %v1267_v19 }
 0x133   : > { %v1258_v49 = vmul.f32 %v1257_v14, %v1256_v38  ;;  %v1265_v2 = vmul.f32 %v1264_v24, %v1263_v39  ;;  %v1272_v17 = vmul.f32 %v1271_v52, %v1270_v60  ;;  %v1540_v8 = vsub.f32 %v4219_v63, %v1539_v7 }
 0x134   : > { %v1546_v14 = vsub.f32 %v4237_v34, %v1545_v9  ;;  %v3630_v7 = vmov 5  }
 0x135   : > { %v1259_v0 = vadd.f32 %v1258_v49, %v1251_v28 }
 0x136   : > { %v1547_v54 = vand.u32 4294901760, %v1546_v14 }
 0x137   : > { %v1266_v3 = vadd.f32 %v1265_v2, %v1259_v0  ;;  %v3631_v2 = vmov 2  }
 0x138   : > { %3500 = vset.pattern.permute.xlu1 %v3631_v2 }
 0x139   : > { %v1273_v23 = vadd.f32 %v1272_v17, %v1266_v3 }
 0x13b   : > { %v1274_v30 = vsub.f32 0.0, %v1273_v23 }
 0x13d   : > { %v1275_v36 = vmul.f32 1.442695, %v1274_v30 }
 0x13f   : > { %3526 = vpow2.f32 %v1275_v36 }
 0x145   : > { %v3527_v41 = vpop.eup %3526 }
 0x146   : > { %v1277_v43 = vadd.f32 1.0, %v3527_v41 }
 0x148   : > { %3528 = vrcp.f32 %v1277_v43 }
 0x14e   : > { %v3529_v47 = vpop.eup %3528 }
 0x14f   : > { %v4257_v48 = vmul.f32 %v3529_v47, %v1273_v23  ;;  %v843_v23 = vld [vmem:[%s5058_s0] sm:$0xf] }
 0x150   : > { %v1709_v43 = vperm.slane %v843_v23, 1  ;;  %v1707_v47 = vperm.slane %v843_v23, 0 }
 0x151   : > { %v1282_v50 = vsel %vm1280_vm1, %v4257_v48, 0 }
 0x152   : > { %v1304_v51 = vand.u32 4294901760, %v1282_v50 }
 0x154   : > { %1335 = vmatmul.f32.vlgmr.msrb.gmra.mxu3 %v1304_v51  ;;  %1664 = vmatmul.f32.vlgmr.msra.gmra.mxu0 %v1304_v51  ;;  %v1305_v57 = vsub.f32 %v1282_v50, %v1304_v51  ;;  %v1711_v50 = vperm.slane %v843_v23, 2 }
 0x155   : > { %1693 = vmatmul.f32.vlgmr.msra.gmra.mxu1 %v1304_v51  ;;  %1427 = vmatpush.xpose.msrb.mxu3 %v1302_v56  ;;  %v1516_v56 = vsub.f32 %v4160_v46, %v1515_v53 }
 0x156   : > { %v1306_v62 = vand.u32 4294901760, %v1305_v57 }
 0x157   : > { %v1517_v27 = vand.u32 4294901760, %v1516_v56 }
 0x158   : > { %v1307_v1 = vsub.f32 %v1305_v57, %v1306_v62 }
 0x15a   : > { %v1308_v22 = vand.u32 4294901760, %v1307_v1  ;;  %v1713_v1 = vperm.slane %v843_v23, 3 }
 0x15c   : > { %1309 = vmatmul.f32.vlgmr.msrb.gmra.mxu2 %v1308_v22  ;;  %1383 = vmatmul.f32.vlgmr.msra.gmra.mxu3 %v1306_v62 }
 0x15d   : > { %1506 = vmatpush.xpose.msra.mxu3 %v1505_v4  ;;  %1405 = vmatpush.xpose.msrb.mxu2 %v1330_v11  ;;  %v1528_v11 = vsub.f32 %v4186_v29, %v1527_v37  ;;  %v1541_v37 = vand.u32 4294901760, %v1540_v8 }
 0x15f   : > { %v1529_v53 = vand.u32 4294901760, %v1528_v11  ;;  %v3635_v11 = vmov 6  }
 0x161   : > { %1512 = vmatpush.xpose.msra.mxu3 %v1511_v26 }
 0x164   : > { %1359 = vmatmul.f32.vlgmr.msra.gmra.mxu2 %v1305_v57  ;;  %1429 = vmatmul.f32.vlgmr.msrb.gmra.mxu3 %v1304_v51 }
 0x165   : > { %1469 = vmatpush.xpose.msra.mxu2 %v4133_v20  ;;  %1518 = vmatpush.xpose.msra.mxu3 %v1517_v27 }
 0x169   : > { %1471 = vmatpush.xpose.msra.mxu2 %v4143_v32  ;;  %1524 = vmatpush.xpose.msra.mxu3 %v1523_v42 }
 0x16c   : > { %1407 = vmatmul.f32.vlgmr.msrb.gmra.mxu2 %v1304_v51 }
 0x16d   : > { %1473 = vmatpush.xpose.msra.mxu2 %v4157_v45  ;;  %1530 = vmatpush.xpose.msra.mxu3 %v1529_v53 }
 0x171   : > { %1475 = vmatpush.xpose.msra.mxu2 %v4170_v59  ;;  %1536 = vmatpush.xpose.msra.mxu3 %v1535_v6 }
 0x175   : > { %1477 = vmatpush.xpose.msra.mxu2 %v4183_v16  ;;  %1542 = vmatpush.xpose.msra.mxu3 %v1541_v37 }
 0x179   : > { %1479 = vmatpush.xpose.msra.mxu2 %v4196_v40  ;;  %1548 = vmatpush.xpose.msra.mxu3 %v1547_v54 }
 0x17c   : > { %1550 = vmatmul.f32.vlgmr.msra.gmra.mxu3 %v1304_v51 }
 0x17d   : > { %1601 = vmatpush.xpose.msrb.mxu3 %v4133_v20  ;;  %1481 = vmatpush.xpose.msra.mxu2 %v4213_v55  ;;  %v3627_v20 = vmov 1  }
 0x17e   : > { %3497 = vset.pattern.permute.xlu0 %v3627_v20 }
 0x181   : > { %1603 = vmatpush.xpose.msrb.mxu3 %v4143_v32  ;;  %1483 = vmatpush.xpose.msra.mxu2 %v4232_v21 }
 0x184   : > { %1489 = vmatmul.f32.vlgmr.msra.gmra.mxu2 %v1308_v22  ;;  %v3634_v22 = vmov 7  }
 0x185   : > { %1564 = vmatpush.xpose.msrb.mxu2 %v4140_v25  ;;  %1605 = vmatpush.xpose.msrb.mxu3 %v4157_v45  ;;  %v3628_v25 = vmov 0  }
 0x186   : > { %3499 = vset.pattern.permute.xlu2 %v3628_v25 }
 0x189   : > { %1567 = vmatpush.xpose.msrb.mxu2 %v4147_v35  ;;  %1607 = vmatpush.xpose.msrb.mxu3 %v4170_v59 }
 0x18d   : > { %1570 = vmatpush.xpose.msrb.mxu2 %v4160_v46  ;;  %1609 = vmatpush.xpose.msrb.mxu3 %v4183_v16 }
 0x191   : > { %1573 = vmatpush.xpose.msrb.mxu2 %v4173_v61  ;;  %1611 = vmatpush.xpose.msrb.mxu3 %v4196_v40 }
 0x195   : > { %1576 = vmatpush.xpose.msrb.mxu2 %v4186_v29  ;;  %1613 = vmatpush.xpose.msrb.mxu3 %v4213_v55 }
 0x199   : > { %1579 = vmatpush.xpose.msrb.mxu2 %v4199_v44  ;;  %1615 = vmatpush.xpose.msrb.mxu3 %v4232_v21  ;;  %v3515_v21 = vld [vmem:[%s5057_s8] ss:$0 sm:$0xff]  ;;  %s3375_s8 = scalar_lea.hbm %s5018_s27, %s3446_s6 }
 0x19c   : > { %1619 = vmatmul.f32.vlgmr.msrb.gmra.mxu3 %v1306_v62 }
 0x19d   : > { %1582 = vmatpush.xpose.msrb.mxu2 %v4219_v63  ;;  %v3629_v63 = vmov 3  }
 0x1a1   : > { %1585 = vmatpush.xpose.msrb.mxu2 %v4237_v34 }
 0x1a4   : > { %1588 = vmatmul.f32.vlgmr.msrb.gmra.mxu2 %v1305_v57 }
 0x1d1   : > { %v1665_v28 = vpop.f32.mrf.mxu0 }
 0x1d2   : > { %v1694_v39 = vpop.f32.mrf.mxu1 }
 0x1d7   : > { %v1336_v32 = vpop.f32.mrf.mxu3 }
 0x1df   : > { %v1310_v35 = vpop.f32.mrf.mxu2  ;;  %v1384_v45 = vpop.f32.mrf.mxu3 }
 0x1e0   : > { %v1337_v59 = vadd.f32 %v1336_v32, %v1310_v35  ;;  %v1853_v35 = vsub.f32 0.0, %v4240_v13 }
 0x1e7   : > { %v1360_v46 = vpop.f32.mrf.mxu2  ;;  %v1430_v44 = vpop.f32.mrf.mxu3 }
 0x1e8   : > { %v1361_v61 = vadd.f32 %v1360_v46, %v1337_v59 }
 0x1ea   : > { %v1385_v16 = vadd.f32 %v1384_v45, %v1361_v61 }
 0x1ef   : > { %v1408_v29 = vpop.f32.mrf.mxu2 }
 0x1f0   : > { %v1409_v40 = vadd.f32 %v1408_v29, %v1385_v16 }
 0x1f2   : > { %v4311_v55 = vadd.f32 %v1430_v44, %v1409_v40 }
 0x1f4   : > { %1731 = vperm.xlu2 %3499, %v4311_v55   ;;  %1736 = vperm.xlu0 %3497, %v4311_v55  }
 0x1fc   : > { %3498 = vset.pattern.permute.xlu0 %v3629_v63  ;;  %3503 = vset.pattern.permute.xlu2 %v3633_v5 }
 0x1fd   : > { %1746 = vperm.xlu0 %3498, %v4311_v55  }
 0x1ff   : > { %v1551_v15 = vpop.f32.mrf.mxu3 }
 0x205   : > { %3501 = vset.pattern.permute.xlu0 %v3630_v7 }
 0x206   : > { %1828 = vperm.xlu0 %3501, %v4311_v55  }
 0x207   : > { %v1490_v34 = vpop.f32.mrf.mxu2 }
 0x208   : > { %v1491_v9 = vadd.f32 %v3515_v21, %v1490_v34 }
 0x20a   : > { %v1552_v18 = vadd.f32 %v1551_v15, %v1491_v9 }
 0x20e   : > { %3506 = vset.pattern.permute.xlu0 %v3629_v63 }
 0x21f   : > { %v1620_v19 = vpop.f32.mrf.mxu3 }
 0x227   : > { %v1589_v10 = vpop.f32.mrf.mxu2 }
 0x228   : > { %v1590_v12 = vadd.f32 %v1589_v10, %v1552_v18 }
 0x22a   : > { %v1621_v24 = vadd.f32 %v1620_v19, %v1590_v12 }
 0x22c   : > { %v1666_v38 = vadd.f32 %v1665_v28, %v1621_v24 }
 0x22e   : > { %v1695_v49 = vadd.f32 %v1694_v39, %v1666_v38 }
 0x230   : > { %v1698_v52 = vand.u32 2147483647, %v1695_v49  ;;  %v1697_v36 = vmax.f32 %v1695_v49, 0.0 }
 0x232   : > { %v1699_v60 = vsub.f32 0.0, %v1698_v52 }
 0x234   : > { %v1700_v0 = vmul.f32 1.442695, %v1699_v60 }
 0x236   : > { %3530 = vpow2.f32 %v1700_v0 }
 0x23c   : > { %v3531_v3 = vpop.eup %3530 }
 0x23d   : > { %v1702_v17 = vadd.f32 1.0, %v3531_v3 }
 0x23f   : > { %3532 = vlog2.f32 %v1702_v17 }
 0x245   : > { %v3533_v30 = vpop.eup %3532 }
 0x246   : > { %v1704_v41 = vmul.f32 0.6931472, %v3533_v30 }
 0x248   : > { %v1705_v51 = vadd.f32 %v1704_v41, %v1697_v36 }
 0x24a   : > { %v1710_v57 = vmul.f32 %v1709_v43, %v1705_v51  ;;  %v1708_v58 = vmul.f32 %v1707_v47, %v1705_v51  ;;  %v1712_v62 = vmul.f32 %v1711_v50, %v1705_v51  ;;  %v1714_v4 = vmul.f32 %v1713_v1, %v1705_v51 }
 0x24b   : > { %v1706_v26 = vmul.f32 %v1705_v51, %v4257_v48 }
 0x24c   : > { %1716 = vrot.lane.b32.xlu1 %v1710_v57, %s5025_s10 }
 0x24e   : > { %v1732_v53 = vpop.permute.xlu2 %1731 }
 0x24f   : > { %v1734_v37 = vmul.f32 %v1732_v53, %v1706_v26 }
 0x254   : > { %1720 = vrot.lane.b32.xlu1 %v1714_v4, %s5025_s10 }
 0x25c   : > { %1741 = vperm.xlu1 %3500, %v4311_v55  }
 0x264   : > { %3502 = vset.pattern.permute.xlu1 %v3634_v22 }
 0x265   : > { %1844 = vperm.xlu1 %3502, %v4311_v55  }
 0x266   : > { %v1737_v56 = vpop.permute.xlu0 %1736 }
 0x267   : > { %v1739_v27 = vmul.f32 %v1737_v56, %v1706_v26 }
 0x269   : > { %1751 = vrot.lane.b32.xlu2 %v1739_v27, %s5025_s10 }
 0x26d   : > { %3507 = vset.pattern.permute.xlu1 %v3628_v25 }
 0x26f   : > { %v1747_v33 = vpop.permute.xlu0 %1746 }
 0x270   : > { %v1749_v42 = vmul.f32 %v1747_v33, %v1706_v26 }
 0x272   : > { %1755 = vrot.lane.b32.xlu2 %v1749_v42, %s5025_s10 }
 0x278   : > { %v1829_v33 = vpop.permute.xlu0 %1828 }
 0x27a   : > { %1822 = vperm.xlu2 %3503, %v4311_v55  }
 0x282   : > { %3504 = vset.pattern.permute.xlu2 %v3635_v11 }
 0x283   : > { %1838 = vperm.xlu2 %3504, %v4311_v55   ;;  %v1854_v55 = vmul.f32 1.442695, %v1853_v35 }
 0x28b   : > { %3505 = vset.pattern.permute.xlu2 %v3627_v20  ;;  %v848_v20 = vld [vmem:[%s5059_s28 + $0x18] sm:$0xff] }
 0x28c   : > { %v1877_v29 = vsel %vm1280_vm1, %v848_v20, 0 }
 0x28d   : > { %v4349_v63 = vand.u32 4294901760, %v1877_v29 }
 0x28f   : > { %v4352_v15 = vsub.f32 %v1877_v29, %v4349_v63  ;;  %1892 = vmatpush.xpose.msra.mxu2 %v4349_v63  ;;  %1992 = vmatpush.xpose.msrb.mxu1 %v4349_v63  ;;  %v846_v29 = vld [vmem:[%s5059_s28 + $0x8] sm:$0xff] }
 0x291   : > { %v1922_v19 = vand.u32 4294901760, %v4352_v15  ;;  %1963 = vmatpush.xpose.msrb.mxu0 %v4352_v15 }
 0x293   : > { %v1923_v0 = vsub.f32 %v4352_v15, %v1922_v19  ;;  %v3516_v15 = vld [vmem:[%s5060_s2] ss:$0 sm:$0xff] }
 0x295   : > { %v1924_v36 = vand.u32 4294901760, %v1923_v0  ;;  %v1820_v0 = vmul.f32 %v3516_v15, %v4257_v48 }
 0x297   : > { %1925 = vmatpush.xpose.msra.mxu3 %v1924_v36 }
 0x2be   : > { %v1717_v31 = vpop.permute.xlu1 %1716 }
 0x2bf   : > { %v1723_v6 = vsel %vm1280_vm1, %v1708_v58, %v1717_v31 }
 0x2c0   : > { %v1725_v8 = vmul.f32 1.442695, %v1723_v6 }
 0x2c2   : > { %3534 = vpow2.f32 %v1725_v8 }
 0x2c3   : > { %v1752_v54 = vpop.permute.xlu2 %1751 }
 0x2c4   : > { %v1758_v32 = vsel %vm1280_vm1, %v1734_v37, %v1752_v54 }
 0x2c5   : > { %v1762_v59 = vrot.slane %v1758_v32, 7 }
 0x2c6   : > { %v1721_v14 = vpop.permute.xlu1 %1720 }
 0x2c7   : > { %v1724_v25 = vsel %vm1280_vm1, %v1712_v62, %v1721_v14  ;;  %v1766_v16 = vsel %vm1255_vm2, 0.0, %v1762_v59  ;;  %v847_v59 = vld [vmem:[%s5059_s28 + $0x10] sm:$0xff] }
 0x2c8   : > { %v3535_v45 = vpop.eup %3534  ;;  %v1727_v46 = vmul.f32 1.442695, %v1724_v25 }
 0x2c9   : > { %v1774_v61 = vrot.slane %v3535_v45, 7  ;;  %v1768_v40 = vmul.f32 %v3535_v45, %v1766_v16 }
 0x2ca   : > { %3536 = vpow2.f32 %v1727_v46 }
 0x2cb   : > { %v1778_v44 = vsel %vm1255_vm2, 1.0, %v1774_v61  ;;  %v1770_v34 = vadd.f32 %v1768_v40, %v1758_v32  ;;  %3538 = vpow2.f32 %v1854_v55  ;;  %v1874_v61 = vsel %vm1280_vm1, %v847_v59, 0  ;;  %v2101_v59 = vld [vmem:[%s5005_s14 + $0x48] sm:$0xff] }
 0x2cc   : > { %v1780_v21 = vmul.f32 %v3535_v45, %v1778_v44  ;;  %v1756_v12 = vpop.permute.xlu2 %1755  ;;  %v1893_v20 = vand.u32 4294901760, %v1874_v61 }
 0x2cd   : > { %v1784_v18 = vrot.slane %v1770_v34, 6 }
 0x2ce   : > { %v1742_v9 = vpop.permute.xlu1 %1741  ;;  %v1796_v28 = vrot.slane %v1780_v21, 6  ;;  %v1927_v16 = vsub.f32 %v1874_v61, %v1893_v20  ;;  %1894 = vmatpush.xpose.msra.mxu2 %v1893_v20  ;;  %1994 = vmatpush.xpose.msrb.mxu1 %v1893_v20 }
 0x2cf   : > { %v1744_v10 = vmul.f32 %v1742_v9, %v1706_v26  ;;  %v1788_v38 = vsel %vm1262_vm3, 0.0, %v1784_v18 }
 0x2d0   : > { %v3537_v24 = vpop.eup %3536  ;;  %v1790_v60 = vmul.f32 %v1788_v38, %v1780_v21  ;;  %v1800_v30 = vsel %vm1262_vm3, 1.0, %v1796_v28  ;;  %v1928_v40 = vand.u32 4294901760, %v1927_v16  ;;  %1966 = vmatpush.xpose.msrb.mxu0 %v1927_v16 }
 0x2d1   : > { %v1759_v39 = vsel %vm1280_vm1, %v1744_v10, %v1756_v12  ;;  %v1775_v49 = vrot.slane %v3537_v24, 7  ;;  %v3539_v41 = vpop.eup %3538  ;;  %v1802_v57 = vmul.f32 %v1800_v30, %v1780_v21 }
 0x2d2   : > { %v1763_v52 = vrot.slane %v1759_v39, 7  ;;  %v1792_v23 = vadd.f32 %v1790_v60, %v1770_v34  ;;  %v1856_v62 = vadd.f32 1.0, %v3539_v41  ;;  %v1929_v55 = vsub.f32 %v1927_v16, %v1928_v40  ;;  %v845_v34 = vld [vmem:[%s5059_s28] sm:$0xff]  ;;  %v2106_v41 = vld [vmem:[%s5005_s14 + $0x70] sm:$0xff]  ;;  %s5063_s28 = sld [smem:[#allocation19_spill]] }
 0x2d3   : > { %v1779_v3 = vsel %vm1255_vm2, 1.0, %v1775_v49  ;;  %v1868_v9 = vsel %vm1280_vm1, %v845_v34, 0 }
 0x2d4   : > { %v1767_v17 = vsel %vm1255_vm2, 0.0, %v1763_v52  ;;  %v1781_v47 = vmul.f32 %v3537_v24, %v1779_v3  ;;  %v1806_v50 = vrot.slane %v1792_v23, 4  ;;  %3540 = vrcp.f32 %v1856_v62  ;;  %v1823_v60 = vpop.permute.xlu2 %1822 }
 0x2d5   : > { %v1769_v43 = vmul.f32 %v3537_v24, %v1767_v17  ;;  %v1930_v18 = vand.u32 4294901760, %v1929_v55  ;;  %v1897_v12 = vand.u32 4294901760, %v1868_v9 }
 0x2d6   : > { %v1811_v58 = vsel %vm1810_vm5, 0.0, %v1806_v50  ;;  %v1797_v26 = vrot.slane %v1781_v47, 6  ;;  %v2176_v50 = vsel %vm853_vm0, %v2106_v41, 0 }
 0x2d7   : > { %v1771_v51 = vadd.f32 %v1769_v43, %v1759_v39  ;;  %v1813_v4 = vmul.f32 %v1811_v58, %v1802_v57  ;;  %v1845_v45 = vpop.permute.xlu1 %1844  ;;  %1931 = vmatpush.xpose.msra.mxu3 %v1930_v18  ;;  %v1939_v28 = vsub.f32 %v1868_v9, %v1897_v12  ;;  %v2105_v43 = vld [vmem:[%s5005_s14 + $0x68] sm:$0xff]  ;;  %v2104_v57 = vld [vmem:[%s5005_s14 + $0x60] sm:$0xff]  ;;  %v4410_v62 = vand.u32 4294901760, %v2176_v50 }
 0x2d8   : > { %v1801_v31 = vsel %vm1262_vm3, 1.0, %v1797_v26  ;;  %v2103_v26 = vld [vmem:[%s5005_s14 + $0x58] sm:$0xff]  ;;  %v2100_v18 = vld [vmem:[%s5005_s14 + $0x40] sm:$0xff] }
 0x2d9   : > { %v1785_v1 = vrot.slane %v1771_v51, 6  ;;  %v1815_v27 = vadd.f32 %v1813_v4, %v1792_v23  ;;  %v1803_v37 = vmul.f32 %v1801_v31, %v1781_v47  ;;  %v1940_v39 = vand.u32 4294901760, %v1939_v28 }
 0x2da   : > { %v3541_v14 = vpop.eup %3540  ;;  %v2170_v4 = vsel %vm853_vm0, %v2104_v57, 0  ;;  %v2097_v57 = vld [vmem:[%s5005_s14 + $0x28] sm:$0xff] }
 0x2db   : > { %v1789_v56 = vsel %vm1262_vm3, 0.0, %v1785_v1  ;;  %v1831_v53 = vmul.f32 %v1829_v33, %v1815_v27  ;;  %v1858_v35 = vmul.f32 %v3541_v14, %v4240_v13  ;;  %v1871_v13 = vsel %vm1280_vm1, %v846_v29, 0 }
 0x2dc   : > { %v1791_v42 = vmul.f32 %v1789_v56, %v1781_v47  ;;  %v1895_v44 = vand.u32 4294901760, %v1871_v13  ;;  %v1941_v49 = vsub.f32 %v1939_v28, %v1940_v39 }
 0x2dd   : > { %1833 = vrot.lane.b32.xlu1 %v1831_v53, %s5025_s10  ;;  %v1839_v17 = vpop.permute.xlu2 %1838  ;;  %v2102_v53 = vld [vmem:[%s5005_s14 + $0x50] sm:$0xff] }
 0x2de   : > { %v1793_v6 = vadd.f32 %v1791_v42, %v1771_v51  ;;  %v1933_v21 = vsub.f32 %v1871_v13, %v1895_v44  ;;  %1896 = vmatpush.xpose.msra.mxu2 %v1895_v44  ;;  %1996 = vmatpush.xpose.msrb.mxu1 %v1895_v44  ;;  %v1942_v52 = vand.u32 4294901760, %v1941_v49  ;;  %v2173_v51 = vsel %vm853_vm0, %v2105_v43, 0 }
 0x2df   : > { %v4412_v1 = vand.u32 4294901760, %v2173_v51  ;;  %v4428_v42 = vand.u32 4294901760, %v2170_v4 }
 0x2e0   : > { %v1807_v8 = vrot.slane %v1793_v6, 4  ;;  %v1934_v10 = vand.u32 4294901760, %v1933_v21  ;;  %1969 = vmatpush.xpose.msrb.mxu0 %v1933_v21 }
 0x2e1   : > { %v4426_v33 = vsub.f32 %v2173_v51, %v4412_v1 }
 0x2e2   : > { %v1812_v54 = vsel %vm1810_vm5, 0.0, %v1807_v8  ;;  %v1935_v24 = vsub.f32 %v1933_v21, %v1934_v10  ;;  %1898 = vmatpush.xpose.msra.mxu2 %v1897_v12  ;;  %1998 = vmatpush.xpose.msrb.mxu1 %v1897_v12  ;;  %v2167_v8 = vsel %vm853_vm0, %v2103_v26, 0 }
 0x2e3   : > { %v1814_v25 = vmul.f32 %v1812_v54, %v1803_v37 }
 0x2e4   : > { %v1936_v38 = vand.u32 4294901760, %v1935_v24  ;;  %1972 = vmatpush.xpose.msrb.mxu0 %v1939_v28 }
 0x2e5   : > { %v1816_v32 = vadd.f32 %v1814_v25, %v1793_v6  ;;  %1860 = vrot.lane.b32.xlu1 %v1858_v35, %s5025_s10  ;;  %v2164_v25 = vsel %vm853_vm0, %v2102_v53, 0  ;;  %v2236_v35 = vand.u32 4294901760, %v4426_v33 }
 0x2e6   : > { %2021 = vmatpush.xpose.msrb.mxu2 %v1922_v19  ;;  %1937 = vmatpush.xpose.msra.mxu3 %v1936_v38  ;;  %v1825_v19 = vmul.f32 %v1823_v60, %v1815_v27  ;;  %v4422_v27 = vsub.f32 %v2176_v50, %v4410_v62  ;;  %v4454_v13 = vand.u32 4294901760, %v2164_v25  ;;  %v2099_v60 = vld [vmem:[%s5005_s14 + $0x38] sm:$0xff] }
 0x2e7   : > { %v1847_v46 = vmul.f32 %v1845_v45, %v1816_v32  ;;  %v1841_v30 = vmul.f32 %v1839_v17, %v1816_v32  ;;  %v4446_v45 = vsub.f32 %v2170_v4, %v4428_v42  ;;  %v2237_v55 = vsub.f32 %v4426_v33, %v2236_v35 }
 0x2e8   : > { %v1826_v3 = vadd.f32 %v1825_v19, %v1820_v0  ;;  %v2230_v6 = vand.u32 4294901760, %v4422_v27 }
 0x2e9   : > { %1849 = vrot.lane.b32.xlu0 %v1847_v46, %s5025_s10  ;;  %v4448_v46 = vand.u32 4294901760, %v2167_v8  ;;  %v2242_v21 = vand.u32 4294901760, %v4446_v45  ;;  %v2238_v28 = vand.u32 4294901760, %v2237_v55  ;;  %s3379_s10 = sshll.u32 %s3375_s8, 4  ;;  %s3380_s10 = int_to_ptr.hbm [resolvable:$true] %s3379_s10 }
 0x2ea   : > { %2025 = vmatpush.xpose.msrb.mxu2 %v1928_v40  ;;  %1943 = vmatpush.xpose.msra.mxu3 %v1942_v52  ;;  %v2231_v54 = vsub.f32 %v4422_v27, %v2230_v6  ;;  %v2161_v40 = vsel %vm853_vm0, %v2101_v59, 0  ;;  %v2158_v52 = vsel %vm853_vm0, %v2100_v18, 0  ;;  %s3577_s11 = sshra.s32 %s3380_s10, 4  ;;  %s3578_s11 = int_to_ptr.hbm [resolvable:$true] %s3577_s11 }
 0x2eb   : > { %v4463_v34 = vsub.f32 %v2167_v8, %v4448_v46  ;;  %v4471_v24 = vand.u32 4294901760, %v2161_v40  ;;  %v2243_v38 = vsub.f32 %v4446_v45, %v2242_v21  ;;  %p3584_p0 = scmp.lt.s32.totalorder %s3578_s11, %s5018_s27 }
 0x2ec   : > { %v2232_v29 = vand.u32 4294901760, %v2231_v54  ;;  %v2096_v54 = vld [vmem:[%s5005_s14 + $0x20] sm:$0xff] }
 0x2ed   : > { %v4485_v0 = vsub.f32 %v2161_v40, %v4471_v24 }
 0x2ee   : > { %2052 = vmatpush.xpose.msrb.mxu3 %v4349_v63  ;;  %2029 = vmatpush.xpose.msrb.mxu2 %v1934_v10  ;;  %v2107_v63 = vld [vmem:[%s5005_s14 + $0x78] sm:$0xff] }
 0x2ef   : > { %v2179_v48 = vsel %vm853_vm0, %v2107_v63, 0  ;;  %v2098_v63 = vld [vmem:[%s5005_s14 + $0x30] sm:$0xff]  ;;  %v2260_v41 = vand.u32 4294901760, %v4485_v0 }
 0x2f0   : > { %v4408_v58 = vand.u32 4294901760, %v2179_v48  ;;  %v2152_v51 = vsel %vm853_vm0, %v2098_v63, 0 }
 0x2f1   : > { %v2261_v4 = vsub.f32 %v4485_v0, %v2260_v41 }
 0x2f2   : > { %2054 = vmatpush.xpose.msrb.mxu3 %v1893_v20  ;;  %2033 = vmatpush.xpose.msrb.mxu2 %v1940_v39  ;;  %v4419_v56 = vsub.f32 %v2179_v48, %v4408_v58  ;;  %v2248_v39 = vand.u32 4294901760, %v4463_v34 }
 0x2f3   : > { %2182 = vmatpush.xpose.msra.mxu0 %v4408_v58 }
 0x2f4   : > { %v2224_v31 = vand.u32 4294901760, %v4419_v56  ;;  %v2249_v17 = vsub.f32 %v4463_v34, %v2248_v39 }
 0x2f6   : > { %2056 = vmatpush.xpose.msrb.mxu3 %v1895_v44  ;;  %v2225_v14 = vsub.f32 %v4419_v56, %v2224_v31 }
 0x2f7   : > { %2184 = vmatpush.xpose.msra.mxu0 %v4410_v62 }
 0x2f8   : > { %v2226_v20 = vand.u32 4294901760, %v2225_v14  ;;  %v2149_v14 = vsel %vm853_vm0, %v2097_v57, 0  ;;  %v2092_v57 = vld [vmem:[%s5005_s14] sm:$0xff] }
 0x2fa   : > { %2058 = vmatpush.xpose.msrb.mxu3 %v1897_v12  ;;  %2227 = vmatpush.xpose.msra.mxu1 %v2226_v20  ;;  %v4469_v12 = vsub.f32 %v2164_v25, %v4454_v13  ;;  %v2262_v25 = vand.u32 4294901760, %v2261_v4  ;;  %v4538_v20 = vand.u32 4294901760, %v2149_v14 }
 0x2fb   : > { %2186 = vmatpush.xpose.msra.mxu0 %v4412_v1 }
 0x2fc   : > { %v2254_v19 = vand.u32 4294901760, %v4469_v12  ;;  %v4554_v18 = vsub.f32 %v2149_v14, %v4538_v20 }
 0x2fe   : > { %2233 = vmatpush.xpose.msra.mxu1 %v2232_v29  ;;  %v2255_v48 = vsub.f32 %v4469_v12, %v2254_v19  ;;  %v2095_v29 = vld [vmem:[%s5005_s14 + $0x18] sm:$0xff] }
 0x2ff   : > { %2188 = vmatpush.xpose.msra.mxu0 %v4428_v42 }
 0x300   : > { %v2256_v53 = vand.u32 4294901760, %v2255_v48 }
 0x302   : > { %2239 = vmatpush.xpose.msra.mxu1 %v2238_v28  ;;  %v2094_v28 = vld [vmem:[%s5005_s14 + $0x10] sm:$0xff] }
 0x303   : > { %2190 = vmatpush.xpose.msra.mxu0 %v4448_v46 }
 0x307   : > { %2192 = vmatpush.xpose.msra.mxu0 %v4454_v13 }
 0x30b   : > { %2194 = vmatpush.xpose.msra.mxu0 %v4471_v24 }
 0x34f   : > { %v1834_v23 = vpop.permute.xlu1 %1833 }
 0x350   : > { %v1836_v36 = vadd.f32 %v1834_v23, %v1826_v3  ;;  %v2244_v3 = vand.u32 4294901760, %v2243_v38  ;;  %v4491_v23 = vand.u32 4294901760, %v2158_v52 }
 0x352   : > { %v1842_v47 = vadd.f32 %v1841_v30, %v1836_v36  ;;  %v2155_v30 = vsel %vm853_vm0, %v2099_v60, 0  ;;  %2245 = vmatpush.xpose.msra.mxu1 %v2244_v3  ;;  %v4506_v50 = vsub.f32 %v2158_v52, %v4491_v23  ;;  %2196 = vmatpush.xpose.msra.mxu0 %v4491_v23  ;;  %v2284_v60 = vand.u32 4294901760, %v4554_v18 }
 0x353   : > { %v4499_v43 = vand.u32 4294901760, %v2155_v30  ;;  %v2140_v3 = vsel %vm853_vm0, %v2094_v28, 0 }
 0x354   : > { %v2266_v8 = vand.u32 4294901760, %v4506_v50  ;;  %v2285_v63 = vsub.f32 %v4554_v18, %v2284_v60  ;;  %v4586_v48 = vand.u32 4294901760, %v2140_v3 }
 0x355   : > { %v4518_v26 = vsub.f32 %v2155_v30, %v4499_v43 }
 0x356   : > { %v2267_v59 = vsub.f32 %v4506_v50, %v2266_v8  ;;  %2198 = vmatpush.xpose.msra.mxu0 %v4499_v43 }
 0x357   : > { %v1861_v61 = vpop.permute.xlu1 %1860 }
 0x35b   : > { %v1850_v37 = vpop.permute.xlu0 %1849 }
 0x35c   : > { %v1852_v32 = vadd.f32 %v1850_v37, %v1842_v47  ;;  %v2250_v47 = vand.u32 4294901760, %v2249_v17  ;;  %v4522_v37 = vand.u32 4294901760, %v2152_v51  ;;  %v2093_v17 = vld [vmem:[%s5005_s14 + $0x8] sm:$0xff] }
 0x35e   : > { %v1863_v16 = vmul.f32 %v1861_v61, %v1852_v32  ;;  %2251 = vmatpush.xpose.msra.mxu1 %v2250_v47  ;;  %v2272_v32 = vand.u32 4294901760, %v4518_v26  ;;  %v4536_v61 = vsub.f32 %v2152_v51, %v4522_v37  ;;  %2200 = vmatpush.xpose.msra.mxu0 %v4522_v37  ;;  %v2137_v51 = vsel %vm853_vm0, %v2093_v17, 0 }
 0x360   : > { %v1865_v44 = vsel %vm1280_vm1, %v1863_v16, 0  ;;  %v2146_v16 = vsel %vm853_vm0, %v2096_v54, 0  ;;  %v2273_v55 = vsub.f32 %v4518_v26, %v2272_v32  ;;  %v4600_v54 = vsub.f32 %v2140_v3, %v4586_v48 }
 0x361   : > { %v1899_v9 = vand.u32 4294901760, %v1865_v44  ;;  %v4546_v40 = vand.u32 4294901760, %v2146_v16 }
 0x362   : > { %2257 = vmatpush.xpose.msra.mxu1 %v2256_v53  ;;  %2202 = vmatpush.xpose.msra.mxu0 %v4538_v20  ;;  %v2286_v53 = vand.u32 4294901760, %v2285_v63 }
 0x363   : > { %v1900_v10 = vsub.f32 %v1865_v44, %v1899_v9  ;;  %1945 = vmatmul.f32.vlgmr.msra.gmra.mxu3 %v1899_v9  ;;  %v2268_v44 = vand.u32 4294901760, %v2267_v59  ;;  %v4563_v38 = vsub.f32 %v2146_v16, %v4546_v40  ;;  %v2134_v59 = vsel %vm853_vm0, %v2092_v57, 0 }
 0x364   : > { %2378 = vmatpush.xpose.msra.mxu3 %v4408_v58 }
 0x365   : > { %1975 = vmatmul.f32.vlgmr.msrb.gmra.mxu0 %v1900_v10  ;;  %v1901_v49 = vand.u32 4294901760, %v1900_v10  ;;  %v2290_v30 = vand.u32 4294901760, %v4563_v38 }
 0x366   : > { %2263 = vmatpush.xpose.msra.mxu1 %v2262_v25  ;;  %2204 = vmatpush.xpose.msra.mxu0 %v4546_v40  ;;  %v4602_v25 = vand.u32 4294901760, %v2137_v51 }
 0x367   : > { %2002 = vmatmul.f32.vlgmr.msrb.gmra.mxu1 %v1901_v49  ;;  %v1902_v15 = vsub.f32 %v1900_v10, %v1901_v49  ;;  %v2143_v10 = vsel %vm853_vm0, %v2095_v29, 0  ;;  %v2274_v49 = vand.u32 4294901760, %v2273_v55  ;;  %v2291_v4 = vsub.f32 %v4563_v38, %v2290_v30 }
 0x368   : > { %2380 = vmatpush.xpose.msra.mxu3 %v4410_v62  ;;  %v4613_v55 = vsub.f32 %v2137_v51, %v4602_v25 }
 0x369   : > { %v1903_v36 = vand.u32 4294901760, %v1902_v15  ;;  %v4570_v15 = vand.u32 4294901760, %v2143_v10  ;;  %v2292_v16 = vand.u32 4294901760, %v2291_v4 }
 0x36a   : > { %2269 = vmatpush.xpose.msra.mxu1 %v2268_v44  ;;  %v2302_v44 = vand.u32 4294901760, %v4600_v54 }
 0x36b   : > { %1904 = vmatmul.f32.vlgmr.msra.gmra.mxu2 %v1903_v36  ;;  %2060 = vmatmul.f32.vlgmr.msrb.gmra.mxu3 %v1899_v9  ;;  %v4584_v47 = vsub.f32 %v2143_v10, %v4570_v15  ;;  %v4615_v10 = vand.u32 4294901760, %v2134_v59 }
 0x36c   : > { %2325 = vmatpush.xpose.msra.mxu2 %v4419_v56  ;;  %2382 = vmatpush.xpose.msra.mxu3 %v4412_v1 }
 0x36d   : > { %v2296_v14 = vand.u32 4294901760, %v4584_v47  ;;  %2206 = vmatpush.xpose.msra.mxu0 %v4570_v15  ;;  %v2313_v3 = vsub.f32 %v2134_v59, %v4615_v10 }
 0x36e   : > { %2275 = vmatpush.xpose.msra.mxu1 %v2274_v49  ;;  %v2303_v49 = vsub.f32 %v4600_v54, %v2302_v44 }
 0x36f   : > { %v2297_v29 = vsub.f32 %v4584_v47, %v2296_v14  ;;  %v2314_v63 = vand.u32 4294901760, %v2313_v3 }
 0x370   : > { %2328 = vmatpush.xpose.msra.mxu2 %v4422_v27  ;;  %2384 = vmatpush.xpose.msra.mxu3 %v4428_v42  ;;  %v2304_v17 = vand.u32 4294901760, %v2303_v49 }
 0x371   : > { %v2298_v28 = vand.u32 4294901760, %v2297_v29  ;;  %2208 = vmatpush.xpose.msra.mxu0 %v4586_v48  ;;  %v2315_v57 = vsub.f32 %v2313_v3, %v2314_v63 }
 0x373   : > { %2035 = vmatmul.f32.vlgmr.msrb.gmra.mxu2 %v1899_v9  ;;  %v2278_v9 = vand.u32 4294901760, %v4536_v61  ;;  %v2316_v4 = vand.u32 4294901760, %v2315_v57 }
 0x374   : > { %2331 = vmatpush.xpose.msra.mxu2 %v4426_v33  ;;  %2386 = vmatpush.xpose.msra.mxu3 %v4448_v46 }
 0x375   : > { %v2279_v52 = vsub.f32 %v4536_v61, %v2278_v9  ;;  %2210 = vmatpush.xpose.msra.mxu0 %v4602_v25 }
 0x377   : > { %v2280_v36 = vand.u32 4294901760, %v2279_v52  ;;  %v2308_v52 = vand.u32 4294901760, %v4613_v55 }
 0x378   : > { %2334 = vmatpush.xpose.msra.mxu2 %v4446_v45  ;;  %2388 = vmatpush.xpose.msra.mxu3 %v4454_v13 }
 0x379   : > { %2281 = vmatpush.xpose.msra.mxu1 %v2280_v36  ;;  %v2309_v36 = vsub.f32 %v4613_v55, %v2308_v52  ;;  %2212 = vmatpush.xpose.msra.mxu0 %v4615_v10 }
 0x37b   : > { %v2310_v51 = vand.u32 4294901760, %v2309_v36 }
 0x37c   : > { %2337 = vmatpush.xpose.msra.mxu2 %v4463_v34  ;;  %2390 = vmatpush.xpose.msra.mxu3 %v4471_v24 }
 0x37d   : > { %2287 = vmatpush.xpose.msra.mxu1 %v2286_v53  ;;  %2419 = vmatpush.xpose.msrb.mxu0 %v2224_v31 }
 0x380   : > { %2340 = vmatpush.xpose.msra.mxu2 %v4469_v12  ;;  %2392 = vmatpush.xpose.msra.mxu3 %v4491_v23 }
 0x381   : > { %2293 = vmatpush.xpose.msra.mxu1 %v2292_v16  ;;  %2423 = vmatpush.xpose.msrb.mxu0 %v2230_v6  ;;  %v2116_v16 = vld [vmem:[%s5009_s18 + $0x28] sm:$0xff] }
 0x382   : > { %v2724_v29 = vsel %vm1280_vm1, %v2116_v16, 0 }
 0x384   : > { %2343 = vmatpush.xpose.msra.mxu2 %v4485_v0  ;;  %2394 = vmatpush.xpose.msra.mxu3 %v4499_v43 }
 0x385   : > { %2299 = vmatpush.xpose.msra.mxu1 %v2298_v28  ;;  %2427 = vmatpush.xpose.msrb.mxu0 %v2236_v35 }
 0x388   : > { %2346 = vmatpush.xpose.msra.mxu2 %v4506_v50  ;;  %2396 = vmatpush.xpose.msra.mxu3 %v4522_v37 }
 0x389   : > { %2305 = vmatpush.xpose.msra.mxu1 %v2304_v17  ;;  %2431 = vmatpush.xpose.msrb.mxu0 %v2242_v21 }
 0x38c   : > { %2349 = vmatpush.xpose.msra.mxu2 %v4518_v26  ;;  %2398 = vmatpush.xpose.msra.mxu3 %v4538_v20 }
 0x38d   : > { %2311 = vmatpush.xpose.msra.mxu1 %v2310_v51  ;;  %2435 = vmatpush.xpose.msrb.mxu0 %v2248_v39 }
 0x390   : > { %2352 = vmatpush.xpose.msra.mxu2 %v4536_v61  ;;  %2400 = vmatpush.xpose.msra.mxu3 %v4546_v40 }
 0x391   : > { %2317 = vmatpush.xpose.msra.mxu1 %v2316_v4  ;;  %2439 = vmatpush.xpose.msrb.mxu0 %v2254_v19 }
 0x394   : > { %2355 = vmatpush.xpose.msra.mxu2 %v4554_v18  ;;  %2402 = vmatpush.xpose.msra.mxu3 %v4570_v15 }
 0x395   : > { %2486 = vmatpush.xpose.msrb.mxu1 %v4408_v58  ;;  %2443 = vmatpush.xpose.msrb.mxu0 %v2260_v41  ;;  %v852_v58 = vld [vmem:[%s5061_s13] sm:$0x1]  ;;  %s3583_s13 = scalar_lea.hbm %s5018_s27, 16 }
 0x396   : > { %v3562_v41 = vld [vmem:[%s4091_s5] sm:$0xff] }
 0x398   : > { %2358 = vmatpush.xpose.msra.mxu2 %v4563_v38  ;;  %2404 = vmatpush.xpose.msra.mxu3 %v4586_v48 }
 0x399   : > { %2488 = vmatpush.xpose.msrb.mxu1 %v4410_v62  ;;  %2447 = vmatpush.xpose.msrb.mxu0 %v2266_v8  ;;  %v2069_v62 = vadd.f32 1e-05, %v852_v58  ;;  %v3518_v8 = vld [vmem:[%s5063_s28] ss:$0 sm:$0xff]  ;;  %s5065_s28 = smov 64  }
 0x39b   : > { %3542 = vrsqrt.f32 %v2069_v62  ;;  %vm2076_vm6 = vweird.f32 %v2069_v62 }
 0x39c   : > { %2361 = vmatpush.xpose.msra.mxu2 %v4584_v47  ;;  %2406 = vmatpush.xpose.msra.mxu3 %v4602_v25 }
 0x39d   : > { %2490 = vmatpush.xpose.msrb.mxu1 %v4412_v1  ;;  %2451 = vmatpush.xpose.msrb.mxu0 %v2272_v32  ;;  %v3519_v32 = vld [vmem:[%s5064_s29] ss:$0 sm:$0xff]  ;;  %s807_s29 = sand.u32 1, %s3617_s4  }
 0x39e   : > { %s3443_s0 = sshll.u32 %s807_s29, 3  ;;  %s3365_s3 = scalar_lea.sflag [#allocation3], %s807_s29 }
 0x39f   : > { %s809_s5 = scalar_lea.vmem [#allocation2], %s3443_s0 }
 0x3a0   : > { %2364 = vmatpush.xpose.msra.mxu2 %v4600_v54  ;;  %2408 = vmatpush.xpose.msra.mxu3 %v4615_v10  ;;  %s3377_s9 = sshll.u32 %s809_s5, 4  ;;  %s3378_s9 = int_to_ptr.vmem [resolvable:$true] %s3377_s9 }
 0x3a1   : > { %2492 = vmatpush.xpose.msrb.mxu1 %v4428_v42  ;;  %2455 = vmatpush.xpose.msrb.mxu0 %v2278_v9  ;;  %v3543_v1 = vpop.eup %3542 }
 0x3a2   : > { %v2071_v56 = vmul.f32 %v3543_v1, %v2069_v62  ;;  %vm2077_vm7 = vweird.f32 %v3543_v1 }
 0x3a3   : > { %vm2078_vm8 = vmor %vm2076_vm6, %vm2077_vm7 }
 0x3a4   : > { %2367 = vmatpush.xpose.msra.mxu2 %v4613_v55  ;;  %v2072_v27 = vmul.f32 %v3543_v1, %v2071_v56  ;;  %v2110_v56 = vld [vmem:[%s5008_s17] sm:$0xff] }
 0x3a5   : > { %2494 = vmatpush.xpose.msrb.mxu1 %v4448_v46  ;;  %2459 = vmatpush.xpose.msrb.mxu0 %v2284_v60 }
 0x3a6   : > { %v2073_v33 = vmul.f32 0.5, %v2072_v27 }
 0x3a8   : > { %2370 = vmatpush.xpose.msra.mxu2 %v2313_v3  ;;  %v2074_v45 = vsub.f32 1.5, %v2073_v33  ;;  %v2114_v3 = vld [vmem:[%s5009_s18 + $0x18] sm:$0xff]  ;;  %v2557_v33 = vsel %vm1280_vm1, %v2110_v56, 0 }
 0x3a9   : > { %2496 = vmatpush.xpose.msrb.mxu1 %v4454_v13  ;;  %2463 = vmatpush.xpose.msrb.mxu0 %v2290_v30  ;;  %v2118_v30 = vld [vmem:[%s5009_s18 + $0x38] sm:$0xff] }
 0x3aa   : > { %v2075_v21 = vmul.f32 %v3543_v1, %v2074_v45  ;;  %v2730_v47 = vsel %vm1280_vm1, %v2118_v30, 0 }
 0x3ac   : > { %v2079_v19 = vsel %vm2078_vm8, %v3543_v1, %v2075_v21  ;;  %v2113_v1 = vld [vmem:[%s5009_s18 + $0x10] sm:$0xff] }
 0x3ad   : > { %2498 = vmatpush.xpose.msrb.mxu1 %v4471_v24  ;;  %2467 = vmatpush.xpose.msrb.mxu0 %v2296_v14  ;;  %v2081_v50 = vperm.slane %v2079_v19, 0  ;;  %v2117_v14 = vld [vmem:[%s5009_s18 + $0x30] sm:$0xff]  ;;  %v2715_v27 = vsel %vm1280_vm1, %v2113_v1, 0 }
 0x3ae   : > { %v2727_v54 = vsel %vm1280_vm1, %v2117_v14, 0 }
 0x3b1   : > { %2500 = vmatpush.xpose.msrb.mxu1 %v4491_v23  ;;  %2471 = vmatpush.xpose.msrb.mxu0 %v2302_v44  ;;  %v3517_v23 = vld [vmem:[%s5062_s12] ss:$0 sm:$0xff]  ;;  %v4724_v44 = vand.u32 4294901760, %v2724_v29 }
 0x3b3   : > { %v4727_v55 = vsub.f32 %v2724_v29, %v4724_v44 }
 0x3b5   : > { %2502 = vmatpush.xpose.msrb.mxu1 %v4499_v43  ;;  %2475 = vmatpush.xpose.msrb.mxu0 %v2308_v52 }
 0x3b9   : > { %2504 = vmatpush.xpose.msrb.mxu1 %v4522_v37  ;;  %2479 = vmatpush.xpose.msrb.mxu0 %v2314_v63  ;;  %v2718_v63 = vsel %vm1280_vm1, %v2114_v3, 0 }
 0x3ba   : > { %v4746_v57 = vand.u32 4294901760, %v2718_v63 }
 0x3bc   : > { %v4749_v62 = vsub.f32 %v2718_v63, %v4746_v57 }
 0x3bd   : > { %2506 = vmatpush.xpose.msrb.mxu1 %v4538_v20 }
 0x3c1   : > { %2508 = vmatpush.xpose.msrb.mxu1 %v4546_v40 }
 0x3c5   : > { %2510 = vmatpush.xpose.msrb.mxu1 %v4570_v15 }
 0x3c9   : > { %2512 = vmatpush.xpose.msrb.mxu1 %v4586_v48  ;;  %v4702_v48 = vand.u32 4294901760, %v2730_v47 }
 0x3cb   : > { %v4705_v53 = vsub.f32 %v2730_v47, %v4702_v48 }
 0x3cd   : > { %2514 = vmatpush.xpose.msrb.mxu1 %v4602_v25  ;;  %v4713_v25 = vand.u32 4294901760, %v2727_v54 }
 0x3cf   : > { %v4716_v59 = vsub.f32 %v2727_v54, %v4713_v25 }
 0x3d1   : > { %2516 = vmatpush.xpose.msrb.mxu1 %v4615_v10  ;;  %v2115_v10 = vld [vmem:[%s5009_s18 + $0x20] sm:$0xff] }
 0x3d2   : > { %v2721_v28 = vsel %vm1280_vm1, %v2115_v10, 0 }
 0x3d3   : > { %v4735_v49 = vand.u32 4294901760, %v2721_v28 }
 0x3d5   : > { %v4738_v52 = vsub.f32 %v2721_v28, %v4735_v49 }
 0x3e2   : > { %v1976_v35 = vpop.f32.mrf.mxu0 }
 0x3e4   : > { %v2003_v13 = vpop.f32.mrf.mxu1 }
 0x3e6   : > { %v1946_v42 = vpop.f32.mrf.mxu3 }
 0x3ee   : > { %v1905_v31 = vpop.f32.mrf.mxu2  ;;  %v2061_v39 = vpop.f32.mrf.mxu3 }
 0x3ef   : > { %v1947_v6 = vadd.f32 %v1946_v42, %v1905_v31  ;;  %v4761_v42 = vand.u32 4294901760, %v2715_v27  ;;  %v4763_v31 = vand.u32 4294901760, %v2557_v33 }
 0x3f1   : > { %v1977_v46 = vadd.f32 %v1976_v35, %v1947_v6  ;;  %v2108_v35 = vld [vmem:[%s5006_s15] sm:$0xf]  ;;  %v4776_v21 = vsub.f32 %v2557_v33, %v4763_v31  ;;  %2575 = vmatpush.xpose.msrb.mxu2 %v4763_v31 }
 0x3f2   : > { %v2544_v16 = vperm.slane %v2108_v35, 0 }
 0x3f3   : > { %v2004_v34 = vadd.f32 %v2003_v13, %v1977_v46  ;;  %v4769_v46 = vsub.f32 %v2715_v27, %v4761_v42  ;;  %v2112_v13 = vld [vmem:[%s5009_s18 + $0x8] sm:$0xff] }
 0x3f6   : > { %v2036_v12 = vpop.f32.mrf.mxu2 }
 0x3f7   : > { %v2037_v24 = vadd.f32 %v2036_v12, %v2004_v34  ;;  %v2712_v12 = vsel %vm1280_vm1, %v2112_v13, 0 }
 0x3f8   : > { %v4781_v19 = vand.u32 4294901760, %v2712_v12 }
 0x3f9   : > { %v2062_v0 = vadd.f32 %v2061_v39, %v2037_v24  ;;  %v2522_v39 = vperm.slane %v2108_v35, 3 }
 0x3fb   : > { %v2064_v43 = vadd.f32 %v3562_v41, %v2062_v0  ;;  %v2602_v0 = vand.u32 4294901760, %v4776_v21 }
 0x3fd   : > { %v2068_v26 = vsub.f32 %v2064_v43, %v3517_v23  ;;  %v3520_v43 = vld [vmem:[%s5007_s16] ss:$0 sm:$0xff] }
 0x3ff   : > { %v2083_v37 = vmul.f32 %v2081_v50, %v2068_v26  ;;  %v4791_v50 = vsub.f32 %v2712_v12, %v4781_v19  ;;  %v2603_v26 = vsub.f32 %v4776_v21, %v2602_v0 }
 0x401   : > { %v2087_v61 = vmul.f32 %v3518_v8, %v2083_v37  ;;  %v2111_v8 = vld [vmem:[%s5009_s18] sm:$0xff]  ;;  %v2532_v37 = vperm.slane %v2108_v35, 2 }
 0x403   : > { %v4694_v20 = vadd.f32 %v3519_v32, %v2087_v61  ;;  %v2709_v32 = vsel %vm1280_vm1, %v2111_v8, 0 }
 0x405   : > { %v2131_v40 = vsel %vm853_vm0, %v4694_v20, 0 }
 0x406   : > { %v2213_v9 = vand.u32 4294901760, %v2131_v40 }
 0x408   : > { %2319 = vmatmul.f32.vlgmr.msra.gmra.mxu1 %v2213_v9  ;;  %v2214_v18 = vsub.f32 %v2131_v40, %v2213_v9 }
 0x409   : > { %2873 = vmatpush.xpose.msra.mxu1 %v4702_v48 }
 0x40a   : > { %2373 = vmatmul.f32.vlgmr.msra.gmra.mxu2 %v2214_v18  ;;  %v2215_v38 = vand.u32 4294901760, %v2214_v18 }
 0x40b   : > { %2628 = vmatpush.xpose.msra.mxu2 %v4776_v21  ;;  %v2781_v21 = vand.u32 4294901760, %v4716_v59 }
 0x40c   : > { %2412 = vmatmul.f32.vlgmr.msra.gmra.mxu3 %v2215_v38  ;;  %v2216_v60 = vsub.f32 %v2214_v18, %v2215_v38  ;;  %v2538_v38 = vperm.slane %v2108_v35, 1 }
 0x40d   : > { %2875 = vmatpush.xpose.msra.mxu1 %v4713_v25 }
 0x40e   : > { %v2217_v15 = vand.u32 4294901760, %v2216_v60  ;;  %v2604_v60 = vand.u32 4294901760, %v2603_v26 }
 0x410   : > { %2218 = vmatmul.f32.vlgmr.msra.gmra.mxu0 %v2217_v15  ;;  %2518 = vmatmul.f32.vlgmr.msrb.gmra.mxu1 %v2213_v9  ;;  %v4804_v15 = vand.u32 4294901760, %v2709_v32 }
 0x411   : > { %2836 = vmatpush.xpose.msra.mxu0 %v4705_v53  ;;  %2877 = vmatpush.xpose.msra.mxu1 %v4724_v44 }
 0x412   : > { %2605 = vmatpush.xpose.msrb.mxu3 %v2604_v60  ;;  %v4809_v29 = vsub.f32 %v2709_v32, %v4804_v15  ;;  %v2799_v32 = vand.u32 4294901760, %v4749_v62 }
 0x415   : > { %2839 = vmatpush.xpose.msra.mxu0 %v4716_v59  ;;  %2879 = vmatpush.xpose.msra.mxu1 %v4735_v49 }
 0x416   : > { %2651 = vmatpush.xpose.msra.mxu3 %v4763_v31 }
 0x418   : > { %2481 = vmatmul.f32.vlgmr.msrb.gmra.mxu0 %v2213_v9 }
 0x419   : > { %2842 = vmatpush.xpose.msra.mxu0 %v4727_v55  ;;  %2881 = vmatpush.xpose.msra.mxu1 %v4746_v57 }
 0x41d   : > { %2845 = vmatpush.xpose.msra.mxu0 %v4738_v52  ;;  %2883 = vmatpush.xpose.msra.mxu1 %v4761_v42 }
 0x421   : > { %2848 = vmatpush.xpose.msra.mxu0 %v4749_v62  ;;  %2885 = vmatpush.xpose.msra.mxu1 %v4781_v19 }
 0x425   : > { %2851 = vmatpush.xpose.msra.mxu0 %v4769_v46  ;;  %2887 = vmatpush.xpose.msra.mxu1 %v4804_v15 }
 0x429   : > { %2854 = vmatpush.xpose.msra.mxu0 %v4791_v50 }
 0x42d   : > { %2857 = vmatpush.xpose.msra.mxu0 %v4809_v29 }
 0x485   : > { %v2320_v17 = vpop.f32.mrf.mxu1 }
 0x48d   : > { %v2219_v36 = vpop.f32.mrf.mxu0  ;;  %v2374_v4 = vpop.f32.mrf.mxu2 }
 0x48e   : > { %v2321_v51 = vadd.f32 %v2320_v17, %v2219_v36  ;;  %v2519_v23 = vpop.f32.mrf.mxu1 }
 0x48f   : > { %v2413_v6 = vpop.f32.mrf.mxu3 }
 0x490   : > { %v2375_v58 = vadd.f32 %v2374_v4, %v2321_v51 }
 0x492   : > { %v2414_v45 = vadd.f32 %v2413_v6, %v2375_v58  ;;  %v2775_v6 = vand.u32 4294901760, %v4705_v53 }
 0x494   : > { %v2776_v13 = vsub.f32 %v4705_v53, %v2775_v6  ;;  %v2793_v53 = vand.u32 4294901760, %v4738_v52 }
 0x495   : > { %v2482_v34 = vpop.f32.mrf.mxu0 }
 0x496   : > { %v2483_v24 = vadd.f32 %v2482_v34, %v2414_v45 }
 0x498   : > { %v4785_v41 = vadd.f32 %v2519_v23, %v2483_v24  ;;  %v2777_v24 = vand.u32 4294901760, %v2776_v13  ;;  %v2787_v23 = vand.u32 4294901760, %v4727_v55 }
 0x49a   : > { %v2523_v61 = vmul.f32 %v2522_v39, %v4785_v41  ;;  %v2529_v40 = vrot.slane %v4785_v41, 7  ;;  %v2535_v9 = vrot.slane %v4785_v41, 6  ;;  %v2541_v18 = vrot.slane %v4785_v41, 5 }
 0x49b   : > { %v2782_v39 = vsub.f32 %v4716_v59, %v2781_v21 }
 0x49c   : > { %v2527_v30 = vadd.f32 %v3520_v43, %v2523_v61  ;;  %v2531_v47 = vsel %vm1255_vm2, 0.0, %v2529_v40  ;;  %v2537_v14 = vsel %vm1262_vm3, 0.0, %v2535_v9  ;;  %v2543_v10 = vsel %vm1269_vm4, 0.0, %v2541_v18 }
 0x49d   : > { %v2533_v54 = vmul.f32 %v2532_v37, %v2531_v47  ;;  %v2539_v3 = vmul.f32 %v2538_v38, %v2537_v14  ;;  %v2545_v36 = vmul.f32 %v2544_v16, %v2543_v10  ;;  %v2783_v26 = vand.u32 4294901760, %v2782_v39 }
 0x49e   : > { %v2794_v37 = vsub.f32 %v4738_v52, %v2793_v53  ;;  %v2800_v61 = vsub.f32 %v4749_v62, %v2799_v32  ;;  %v2811_v52 = vand.u32 4294901760, %v4791_v50  ;;  %v2817_v62 = vand.u32 4294901760, %v4809_v29 }
 0x49f   : > { %v2534_v28 = vadd.f32 %v2533_v54, %v2527_v30 }
 0x4a0   : > { %v2795_v59 = vand.u32 4294901760, %v2794_v37  ;;  %v2812_v18 = vsub.f32 %v4791_v50, %v2811_v52  ;;  %v2818_v60 = vsub.f32 %v4809_v29, %v2817_v62 }
 0x4a1   : > { %v2540_v17 = vadd.f32 %v2539_v3, %v2534_v28 }
 0x4a2   : > { %v2813_v38 = vand.u32 4294901760, %v2812_v18 }
 0x4a3   : > { %v2546_v63 = vadd.f32 %v2545_v36, %v2540_v17 }
 0x4a5   : > { %v2547_v51 = vsub.f32 0.0, %v2546_v63 }
 0x4a7   : > { %v2548_v4 = vmul.f32 1.442695, %v2547_v51 }
 0x4a9   : > { %3544 = vpow2.f32 %v2548_v4 }
 0x4af   : > { %v3545_v58 = vpop.eup %3544 }
 0x4b0   : > { %v2550_v1 = vadd.f32 1.0, %v3545_v58 }
 0x4b2   : > { %3546 = vrcp.f32 %v2550_v1 }
 0x4b8   : > { %v3547_v56 = vpop.eup %3546 }
 0x4b9   : > { %v4815_v27 = vmul.f32 %v3547_v56, %v2546_v63 }
 0x4bb   : > { %v2554_v33 = vsel %vm1280_vm1, %v4815_v27, 0 }
 0x4bc   : > { %v4820_v35 = vand.u32 4294901760, %v2554_v33 }
 0x4be   : > { %2607 = vmatmul.f32.vlgmr.msrb.gmra.mxu3 %v4820_v35  ;;  %v2577_v45 = vsub.f32 %v2554_v33, %v4820_v35 }
 0x4bf   : > { %2699 = vmatpush.xpose.msrb.mxu3 %v4763_v31  ;;  %v2788_v31 = vsub.f32 %v4727_v55, %v2787_v23  ;;  %v2801_v55 = vand.u32 4294901760, %v2800_v61 }
 0x4c0   : > { %2860 = vmatmul.f32.vlgmr.msra.gmra.mxu0 %v2577_v45  ;;  %v2578_v34 = vand.u32 4294901760, %v2577_v45 }
 0x4c1   : > { %v2789_v8 = vand.u32 4294901760, %v2788_v31 }
 0x4c2   : > { %2891 = vmatmul.f32.vlgmr.msra.gmra.mxu1 %v2578_v34  ;;  %v2579_v12 = vsub.f32 %v2577_v45, %v2578_v34 }
 0x4c4   : > { %v2580_v43 = vand.u32 4294901760, %v2579_v12 }
 0x4c6   : > { %2581 = vmatmul.f32.vlgmr.msrb.gmra.mxu2 %v2580_v43  ;;  %2655 = vmatmul.f32.vlgmr.msra.gmra.mxu3 %v2578_v34 }
 0x4c7   : > { %2778 = vmatpush.xpose.msra.mxu3 %v2777_v24  ;;  %2677 = vmatpush.xpose.msrb.mxu2 %v2602_v0  ;;  %v2805_v0 = vand.u32 4294901760, %v4769_v46 }
 0x4c9   : > { %v2806_v40 = vsub.f32 %v4769_v46, %v2805_v0  ;;  %v2819_v46 = vand.u32 4294901760, %v2818_v60 }
 0x4cb   : > { %2784 = vmatpush.xpose.msra.mxu3 %v2783_v26  ;;  %v2807_v9 = vand.u32 4294901760, %v2806_v40 }
 0x4ce   : > { %2631 = vmatmul.f32.vlgmr.msra.gmra.mxu2 %v2577_v45  ;;  %2701 = vmatmul.f32.vlgmr.msrb.gmra.mxu3 %v4820_v35 }
 0x4cf   : > { %2741 = vmatpush.xpose.msra.mxu2 %v4702_v48  ;;  %2790 = vmatpush.xpose.msra.mxu3 %v2789_v8 }
 0x4d3   : > { %2743 = vmatpush.xpose.msra.mxu2 %v4713_v25  ;;  %2796 = vmatpush.xpose.msra.mxu3 %v2795_v59 }
 0x4d6   : > { %2679 = vmatmul.f32.vlgmr.msrb.gmra.mxu2 %v4820_v35 }
 0x4d7   : > { %2745 = vmatpush.xpose.msra.mxu2 %v4724_v44  ;;  %2802 = vmatpush.xpose.msra.mxu3 %v2801_v55 }
 0x4db   : > { %2747 = vmatpush.xpose.msra.mxu2 %v4735_v49  ;;  %2808 = vmatpush.xpose.msra.mxu3 %v2807_v9 }
 0x4df   : > { %2749 = vmatpush.xpose.msra.mxu2 %v4746_v57  ;;  %2814 = vmatpush.xpose.msra.mxu3 %v2813_v38  ;;  %v3124_v38 = vsub.f32 0.0, %v4785_v41 }
 0x4e3   : > { %2751 = vmatpush.xpose.msra.mxu2 %v4761_v42  ;;  %2820 = vmatpush.xpose.msra.mxu3 %v2819_v46 }
 0x4e6   : > { %2822 = vmatmul.f32.vlgmr.msra.gmra.mxu3 %v4820_v35 }
 0x4e7   : > { %2949 = vmatpush.xpose.msrb.mxu3 %v4702_v48  ;;  %2753 = vmatpush.xpose.msra.mxu2 %v4781_v19 }
 0x4eb   : > { %2951 = vmatpush.xpose.msrb.mxu3 %v4713_v25  ;;  %2755 = vmatpush.xpose.msra.mxu2 %v4804_v15 }
 0x4ee   : > { %2761 = vmatmul.f32.vlgmr.msra.gmra.mxu2 %v2580_v43 }
 0x4ef   : > { %2906 = vmatpush.xpose.msrb.mxu2 %v2775_v6  ;;  %2953 = vmatpush.xpose.msrb.mxu3 %v4724_v44  ;;  %v2120_v6 = vld [vmem:[%s5011_s20] sm:$0xf] }
 0x4f0   : > { %v2981_v45 = vperm.slane %v2120_v6, 1  ;;  %v2985_v34 = vperm.slane %v2120_v6, 3  ;;  %v2983_v12 = vperm.slane %v2120_v6, 2  ;;  %v2979_v24 = vperm.slane %v2120_v6, 0 }
 0x4f3   : > { %2910 = vmatpush.xpose.msrb.mxu2 %v2781_v21  ;;  %2955 = vmatpush.xpose.msrb.mxu3 %v4735_v49 }
 0x4f7   : > { %2914 = vmatpush.xpose.msrb.mxu2 %v2787_v23  ;;  %2957 = vmatpush.xpose.msrb.mxu3 %v4746_v57 }
 0x4fb   : > { %2918 = vmatpush.xpose.msrb.mxu2 %v2793_v53  ;;  %2959 = vmatpush.xpose.msrb.mxu3 %v4761_v42 }
 0x4ff   : > { %2922 = vmatpush.xpose.msrb.mxu2 %v2799_v32  ;;  %2961 = vmatpush.xpose.msrb.mxu3 %v4781_v19 }
 0x503   : > { %2926 = vmatpush.xpose.msrb.mxu2 %v2805_v0  ;;  %2963 = vmatpush.xpose.msrb.mxu3 %v4804_v15  ;;  %v3521_v15 = vld [vmem:[%s5010_s19] ss:$0 sm:$0xff] }
 0x506   : > { %2965 = vmatmul.f32.vlgmr.msrb.gmra.mxu3 %v4820_v35 }
 0x507   : > { %2930 = vmatpush.xpose.msrb.mxu2 %v2811_v52 }
 0x50b   : > { %2934 = vmatpush.xpose.msrb.mxu2 %v2817_v62 }
 0x50e   : > { %2936 = vmatmul.f32.vlgmr.msrb.gmra.mxu2 %v4820_v35 }
 0x53d   : > { %v2861_v28 = vpop.f32.mrf.mxu0 }
 0x53f   : > { %v2892_v17 = vpop.f32.mrf.mxu1 }
 0x541   : > { %v2608_v48 = vpop.f32.mrf.mxu3 }
 0x549   : > { %v2582_v25 = vpop.f32.mrf.mxu2  ;;  %v2656_v44 = vpop.f32.mrf.mxu3 }
 0x54a   : > { %v2609_v57 = vadd.f32 %v2608_v48, %v2582_v25  ;;  %v3125_v25 = vmul.f32 1.442695, %v3124_v38 }
 0x551   : > { %v2632_v49 = vpop.f32.mrf.mxu2  ;;  %v2702_v14 = vpop.f32.mrf.mxu3 }
 0x552   : > { %v2633_v50 = vadd.f32 %v2632_v49, %v2609_v57 }
 0x554   : > { %v2657_v30 = vadd.f32 %v2656_v44, %v2633_v50 }
 0x559   : > { %v2680_v42 = vpop.f32.mrf.mxu2 }
 0x55a   : > { %v2681_v47 = vadd.f32 %v2680_v42, %v2657_v30 }
 0x55c   : > { %v2703_v19 = vadd.f32 %v2702_v14, %v2681_v47 }
 0x55e   : > { %3018 = vperm.xlu0 %3506, %v2703_v19   ;;  %3008 = vperm.xlu2 %3505, %v2703_v19  }
 0x566   : > { %3508 = vset.pattern.permute.xlu0 %v3631_v2  ;;  %3509 = vset.pattern.permute.xlu2 %v3630_v7 }
 0x567   : > { %3013 = vperm.xlu0 %3508, %v2703_v19  }
 0x569   : > { %v2823_v29 = vpop.f32.mrf.mxu3 }
 0x56f   : > { %3513 = vset.pattern.permute.xlu0 %v3634_v22 }
 0x571   : > { %v2762_v54 = vpop.f32.mrf.mxu2 }
 0x572   : > { %v2763_v16 = vadd.f32 %v3521_v15, %v2762_v54 }
 0x574   : > { %v2824_v10 = vadd.f32 %v2823_v29, %v2763_v16 }
 0x576   : > { %v2862_v3 = vadd.f32 %v2861_v28, %v2824_v10 }
 0x578   : > { %v2893_v36 = vadd.f32 %v2892_v17, %v2862_v3  ;;  %v2125_v17 = vld [vmem:[%s5013_s22 + $0x18] sm:$0xff] }
 0x589   : > { %v2966_v2 = vpop.f32.mrf.mxu3 }
 0x591   : > { %v2937_v63 = vpop.f32.mrf.mxu2 }
 0x592   : > { %v2938_v51 = vadd.f32 %v2937_v63, %v2893_v36  ;;  %v2124_v36 = vld [vmem:[%s5013_s22 + $0x10] sm:$0xff]  ;;  %v3148_v63 = vsel %vm1280_vm1, %v2125_v17, 0 }
 0x594   : > { %v2967_v4 = vadd.f32 %v2966_v2, %v2938_v51  ;;  %v3145_v51 = vsel %vm1280_vm1, %v2124_v36, 0 }
 0x596   : > { %v2970_v7 = vand.u32 2147483647, %v2967_v4  ;;  %v2969_v13 = vmax.f32 %v2967_v4, 0.0  ;;  %v4902_v4 = vand.u32 4294901760, %v3148_v63 }
 0x598   : > { %v2971_v58 = vsub.f32 0.0, %v2970_v7  ;;  %v4904_v7 = vand.u32 4294901760, %v3145_v51  ;;  %v3192_v6 = vsub.f32 %v3148_v63, %v4902_v4  ;;  %3163 = vmatpush.xpose.msrb.mxu0 %v4902_v4  ;;  %3263 = vmatpush.xpose.msra.mxu3 %v4902_v4 }
 0x59a   : > { %v2972_v1 = vmul.f32 1.442695, %v2971_v58  ;;  %3234 = vmatpush.xpose.msra.mxu2 %v3192_v6 }
 0x59c   : > { %3548 = vpow2.f32 %v2972_v1  ;;  %3165 = vmatpush.xpose.msrb.mxu0 %v4904_v7  ;;  %3265 = vmatpush.xpose.msra.mxu3 %v4904_v7 }
 0x5a2   : > { %v3549_v56 = vpop.eup %3548 }
 0x5a3   : > { %v2974_v33 = vadd.f32 1.0, %v3549_v56 }
 0x5a5   : > { %3550 = vlog2.f32 %v2974_v33 }
 0x5ab   : > { %v3551_v35 = vpop.eup %3550 }
 0x5ac   : > { %v2976_v21 = vmul.f32 0.6931472, %v3551_v35  ;;  %v4909_v35 = vsub.f32 %v3145_v51, %v4904_v7 }
 0x5ae   : > { %v2977_v39 = vadd.f32 %v2976_v21, %v2969_v13  ;;  %v3193_v21 = vand.u32 4294901760, %v3192_v6  ;;  %3237 = vmatpush.xpose.msra.mxu2 %v4909_v35 }
 0x5b0   : > { %v2982_v23 = vmul.f32 %v2981_v45, %v2977_v39  ;;  %v2986_v43 = vmul.f32 %v2985_v34, %v2977_v39  ;;  %v2984_v26 = vmul.f32 %v2983_v12, %v2977_v39  ;;  %v2980_v31 = vmul.f32 %v2979_v24, %v2977_v39 }
 0x5b1   : > { %v4873_v53 = vmul.f32 %v2977_v39, %v4815_v27  ;;  %v3199_v34 = vand.u32 4294901760, %v4909_v35  ;;  %v3194_v39 = vsub.f32 %v3192_v6, %v3193_v21 }
 0x5b2   : > { %2988 = vrot.lane.b32.xlu1 %v2982_v23, %s5065_s28  ;;  %2992 = vrot.lane.b32.xlu2 %v2986_v43, %s5065_s28 }
 0x5b3   : > { %v3200_v23 = vsub.f32 %v4909_v35, %v3199_v34 }
 0x5b8   : > { %v3009_v8 = vpop.permute.xlu2 %3008 }
 0x5b9   : > { %v3011_v37 = vmul.f32 %v3009_v8, %v4873_v53 }
 0x5ba   : > { %3003 = vperm.xlu1 %3507, %v2703_v19  }
 0x5bb   : > { %3023 = vrot.lane.b32.xlu2 %v3011_v37, %s5065_s28 }
 0x5c2   : > { %3510 = vset.pattern.permute.xlu1 %v3634_v22 }
 0x5c3   : > { %3099 = vperm.xlu2 %3509, %v2703_v19  }
 0x5cb   : > { %3511 = vset.pattern.permute.xlu2 %v3633_v5 }
 0x5cc   : > { %3093 = vperm.xlu2 %3511, %v2703_v19  }
 0x5d0   : > { %v3019_v32 = vpop.permute.xlu0 %3018 }
 0x5d1   : > { %v3021_v59 = vmul.f32 %v3019_v32, %v4873_v53 }
 0x5d3   : > { %3027 = vrot.lane.b32.xlu1 %v3021_v59, %s5065_s28  ;;  %v3201_v59 = vand.u32 4294901760, %v3200_v23 }
 0x5d9   : > { %v3014_v1 = vpop.permute.xlu0 %3013 }
 0x5da   : > { %v3016_v45 = vmul.f32 %v3014_v1, %v4873_v53 }
 0x5db   : > { %3115 = vperm.xlu1 %3510, %v2703_v19  }
 0x5e3   : > { %3512 = vset.pattern.permute.xlu1 %v3635_v11 }
 0x5e4   : > { %3109 = vperm.xlu1 %3512, %v2703_v19  }
 0x60c   : > { %v2993_v55 = vpop.permute.xlu2 %2992 }
 0x60d   : > { %v2996_v57 = vsel %vm1280_vm1, %v2984_v26, %v2993_v55 }
 0x60e   : > { %v2999_v47 = vmul.f32 1.442695, %v2996_v57  ;;  %v2122_v57 = vld [vmem:[%s5013_s22] sm:$0xff] }
 0x615   : > { %v3024_v9 = vpop.permute.xlu2 %3023 }
 0x61d   : > { %v3100_v56 = vpop.permute.xlu2 %3099 }
 0x624   : > { %v2989_v61 = vpop.permute.xlu1 %2988 }
 0x625   : > { %v2995_v0 = vsel %vm1280_vm1, %v2980_v31, %v2989_v61 }
 0x626   : > { %v2997_v40 = vmul.f32 1.442695, %v2995_v0 }
 0x628   : > { %3552 = vpow2.f32 %v2997_v40 }
 0x629   : > { %3554 = vpow2.f32 %v3125_v25 }
 0x62a   : > { %3556 = vpow2.f32 %v2999_v47 }
 0x62c   : > { %v3004_v22 = vpop.permute.xlu1 %3003 }
 0x62d   : > { %v3006_v52 = vmul.f32 %v3004_v22, %v4873_v53  ;;  %v3195_v53 = vand.u32 4294901760, %v3194_v39 }
 0x62e   : > { %v3553_v5 = vpop.eup %3552 }
 0x62f   : > { %v3030_v18 = vsel %vm1280_vm1, %v3006_v52, %v3024_v9  ;;  %v3046_v62 = vrot.slane %v3553_v5, 7  ;;  %v3555_v54 = vpop.eup %3554  ;;  %3196 = vmatpush.xpose.msrb.mxu1 %v3195_v53 }
 0x630   : > { %v3034_v60 = vrot.slane %v3030_v18, 7  ;;  %v3127_v28 = vadd.f32 1.0, %v3555_v54  ;;  %v3557_v58 = vpop.eup %3556 }
 0x631   : > { %v3050_v11 = vsel %vm1255_vm2, 1.0, %v3046_v62  ;;  %v3047_v13 = vrot.slane %v3557_v58, 7 }
 0x632   : > { %v3038_v46 = vsel %vm1255_vm2, 0.0, %v3034_v60  ;;  %v3052_v44 = vmul.f32 %v3553_v5, %v3050_v11  ;;  %3558 = vrcp.f32 %v3127_v28 }
 0x633   : > { %v3040_v48 = vmul.f32 %v3553_v5, %v3038_v46  ;;  %v3051_v31 = vsel %vm1255_vm2, 1.0, %v3047_v13  ;;  %3202 = vmatpush.xpose.msrb.mxu1 %v3201_v59 }
 0x634   : > { %v3068_v30 = vrot.slane %v3052_v44, 6  ;;  %v3053_v61 = vmul.f32 %v3557_v58, %v3051_v31 }
 0x635   : > { %v3042_v49 = vadd.f32 %v3040_v48, %v3030_v18  ;;  %v2123_v48 = vld [vmem:[%s5013_s22 + $0x8] sm:$0xff] }
 0x636   : > { %v3072_v15 = vsel %vm1262_vm3, 1.0, %v3068_v30  ;;  %v3069_v40 = vrot.slane %v3053_v61, 6  ;;  %v3142_v25 = vsel %vm1280_vm1, %v2123_v48, 0 }
 0x637   : > { %v3056_v50 = vrot.slane %v3042_v49, 6  ;;  %v3074_v29 = vmul.f32 %v3072_v15, %v3052_v44 }
 0x638   : > { %v3559_v43 = vpop.eup %3558  ;;  %v3073_v9 = vsel %vm1262_vm3, 1.0, %v3069_v40 }
 0x639   : > { %v3060_v42 = vsel %vm1262_vm3, 0.0, %v3056_v50  ;;  %v3129_v32 = vmul.f32 %v3559_v43, %v4785_v41  ;;  %v3075_v62 = vmul.f32 %v3073_v9, %v3053_v61  ;;  %v3139_v50 = vsel %vm1280_vm1, %v2122_v57, 0 }
 0x63a   : > { %v3062_v14 = vmul.f32 %v3060_v42, %v3052_v44  ;;  %v3166_v44 = vand.u32 4294901760, %v3142_v25  ;;  %v3168_v42 = vand.u32 4294901760, %v3139_v50 }
 0x63c   : > { %v3064_v19 = vadd.f32 %v3062_v14, %v3042_v49  ;;  %v3204_v49 = vsub.f32 %v3142_v25, %v3166_v44  ;;  %3167 = vmatpush.xpose.msrb.mxu0 %v3166_v44  ;;  %3267 = vmatpush.xpose.msra.mxu3 %v3166_v44  ;;  %v3210_v14 = vsub.f32 %v3139_v50, %v3168_v42 }
 0x63e   : > { %v3078_v16 = vrot.slane %v3064_v19, 4  ;;  %v3205_v30 = vand.u32 4294901760, %v3204_v49  ;;  %3240 = vmatpush.xpose.msra.mxu2 %v3204_v49  ;;  %v3211_v15 = vand.u32 4294901760, %v3210_v14 }
 0x640   : > { %v3082_v10 = vsel %vm1810_vm5, 0.0, %v3078_v16  ;;  %v3206_v47 = vsub.f32 %v3204_v49, %v3205_v30  ;;  %3169 = vmatpush.xpose.msrb.mxu0 %v3168_v42  ;;  %3269 = vmatpush.xpose.msra.mxu3 %v3168_v42  ;;  %v3212_v54 = vsub.f32 %v3210_v14, %v3211_v15 }
 0x641   : > { %v3084_v3 = vmul.f32 %v3082_v10, %v3074_v29  ;;  %v3522_v29 = vld [vmem:[%s5012_s21] ss:$0 sm:$0xff]  ;;  %v3094_v10 = vpop.permute.xlu2 %3093 }
 0x642   : > { %3243 = vmatpush.xpose.msra.mxu2 %v3210_v14  ;;  %v3213_v16 = vand.u32 4294901760, %v3212_v54 }
 0x643   : > { %v4900_v2 = vadd.f32 %v3084_v3, %v3064_v19  ;;  %v3207_v19 = vand.u32 4294901760, %v3206_v47  ;;  %v3091_v3 = vmul.f32 %v3522_v29, %v4815_v27 }
 0x644   : > { %3292 = vmatpush.xpose.msra.mxu0 %v3193_v21  ;;  %v2129_v21 = vld [vmem:[%s5017_s26] sm:$0x1] }
 0x645   : > { %v3102_v33 = vmul.f32 %v3100_v56, %v4900_v2  ;;  %v3028_v12 = vpop.permute.xlu1 %3027  ;;  %3208 = vmatpush.xpose.msrb.mxu1 %v3207_v19  ;;  %v3096_v28 = vmul.f32 %v3094_v10, %v4900_v2 }
 0x646   : > { %v3031_v24 = vsel %vm1280_vm1, %v3016_v45, %v3028_v12 }
 0x647   : > { %3104 = vrot.lane.b32.xlu0 %v3102_v33, %s5065_s28  ;;  %v3035_v26 = vrot.slane %v3031_v24, 7  ;;  %v3097_v17 = vadd.f32 %v3096_v28, %v3091_v3 }
 0x648   : > { %3296 = vmatpush.xpose.msra.mxu0 %v3199_v34  ;;  %v3340_v34 = vadd.f32 1e-05, %v2129_v21 }
 0x649   : > { %v3039_v8 = vsel %vm1255_vm2, 0.0, %v3035_v26  ;;  %3214 = vmatpush.xpose.msrb.mxu1 %v3213_v16 }
 0x64a   : > { %v3041_v37 = vmul.f32 %v3557_v58, %v3039_v8  ;;  %3560 = vrsqrt.f32 %v3340_v34  ;;  %vm3347_vm9 = vweird.f32 %v3340_v34 }
 0x64c   : > { %v3043_v0 = vadd.f32 %v3041_v37, %v3031_v24  ;;  %3300 = vmatpush.xpose.msra.mxu0 %v3205_v30 }
 0x64d   : > { %v3116_v11 = vpop.permute.xlu1 %3115  ;;  %3323 = vmatpush.xpose.msra.mxu1 %v4902_v4 }
 0x64e   : > { %v3057_v55 = vrot.slane %v3043_v0, 6 }
 0x64f   : > { %3131 = vrot.lane.b32.xlu0 %v3129_v32, %s5065_s28 }
 0x650   : > { %v3061_v22 = vsel %vm1262_vm3, 0.0, %v3057_v55  ;;  %3304 = vmatpush.xpose.msra.mxu0 %v3211_v15  ;;  %v3561_v12 = vpop.eup %3560 }
 0x651   : > { %v3063_v52 = vmul.f32 %v3061_v22, %v3053_v61  ;;  %3325 = vmatpush.xpose.msra.mxu1 %v4904_v7  ;;  %v3342_v24 = vmul.f32 %v3561_v12, %v3340_v34  ;;  %vm3348_vm10 = vweird.f32 %v3561_v12 }
 0x652   : > { %vm3349_vm11 = vmor %vm3347_vm9, %vm3348_vm10 }
 0x653   : > { %v3065_v5 = vadd.f32 %v3063_v52, %v3043_v0  ;;  %v3343_v39 = vmul.f32 %v3561_v12, %v3342_v24 }
 0x655   : > { %v3079_v18 = vrot.slane %v3065_v5, 4  ;;  %3327 = vmatpush.xpose.msra.mxu1 %v3166_v44  ;;  %v3344_v23 = vmul.f32 0.5, %v3343_v39 }
 0x656   : > { %v3110_v36 = vpop.permute.xlu1 %3109 }
 0x657   : > { %v3083_v38 = vsel %vm1810_vm5, 0.0, %v3079_v18  ;;  %v3345_v8 = vsub.f32 1.5, %v3344_v23 }
 0x658   : > { %v3085_v41 = vmul.f32 %v3083_v38, %v3075_v62  ;;  %v3524_v38 = vld [vmem:[%s5014_s23] ss:$0 sm:$0xff] }
 0x659   : > { %3329 = vmatpush.xpose.msra.mxu1 %v3168_v42  ;;  %v3346_v59 = vmul.f32 %v3561_v12, %v3345_v8 }
 0x65a   : > { %v3087_v60 = vadd.f32 %v3085_v41, %v3065_v5  ;;  %v3523_v5 = vld [vmem:[%s5016_s25] ss:$0 sm:$0xff] }
 0x65b   : > { %v3350_v22 = vsel %vm3349_vm11, %v3561_v12, %v3346_v59 }
 0x65c   : > { %v3118_v46 = vmul.f32 %v3116_v11, %v3087_v60  ;;  %v3112_v51 = vmul.f32 %v3110_v36, %v3087_v60  ;;  %v3352_v18 = vperm.slane %v3350_v22, 0  ;;  %v3525_v60 = vld [vmem:[%s5015_s24] ss:$0 sm:$0xff] }
 0x65e   : > { %3120 = vrot.lane.b32.xlu2 %v3118_v46, %s5065_s28  ;;  %s3579_s28 = scalar_lea.hbm %s3578_s11, 8 }
 0x65f   : > { %p3580_p11 = scmp.ne.s32.totalorder %s3578_s11, %s3579_s28  ;;  %p3585_p1 = scmp.lt.s32.totalorder %s3583_s13, %s3579_s28 }
 0x661   : > { %p3581_p12 = pnand %p3580_p11, %p3814_p5  ;;  %p3586_p2 = por %p3585_p1, %p3584_p0 }
 0x663   : > { %p3582_p13 = pneg %p3581_p12 }
 0x665   : > { %p3587_p3 = pnand %p3586_p2, %p3582_p13 }
 0x6b8   : > { %v3121_v1 = vpop.permute.xlu2 %3120 }
 0x6b9   : > { %v3105_v63 = vpop.permute.xlu0 %3104 }
 0x6ba   : > { %v3107_v4 = vadd.f32 %v3105_v63, %v3097_v17 }
 0x6bc   : > { %v3113_v58 = vadd.f32 %v3112_v51, %v3107_v4 }
 0x6be   : > { %v3123_v7 = vadd.f32 %v3121_v1, %v3113_v58 }
 0x6c1   : > { %v3132_v56 = vpop.permute.xlu0 %3131 }
 0x6c2   : > { %v3134_v33 = vmul.f32 %v3132_v56, %v3123_v7 }
 0x6c4   : > { %v3136_v6 = vsel %vm1280_vm1, %v3134_v33, 0 }
 0x6c5   : > { %v3170_v35 = vand.u32 4294901760, %v3136_v6 }
 0x6c7   : > { %v3171_v45 = vsub.f32 %v3136_v6, %v3170_v35  ;;  %3216 = vmatmul.f32.vlgmr.msrb.gmra.mxu1 %v3170_v35 }
 0x6c9   : > { %3246 = vmatmul.f32.vlgmr.msra.gmra.mxu2 %v3171_v45  ;;  %v3172_v13 = vand.u32 4294901760, %v3171_v45 }
 0x6cb   : > { %3273 = vmatmul.f32.vlgmr.msra.gmra.mxu3 %v3172_v13  ;;  %v3173_v2 = vsub.f32 %v3171_v45, %v3172_v13 }
 0x6cd   : > { %v3174_v27 = vand.u32 4294901760, %v3173_v2 }
 0x6cf   : > { %3175 = vmatmul.f32.vlgmr.msrb.gmra.mxu0 %v3174_v27  ;;  %3331 = vmatmul.f32.vlgmr.msra.gmra.mxu1 %v3170_v35 }
 0x6d7   : > { %3306 = vmatmul.f32.vlgmr.msra.gmra.mxu0 %v3170_v35 }
 0x744   : > { %v3217_v43 = vpop.f32.mrf.mxu1 }
 0x74c   : > { %v3176_v26 = vpop.f32.mrf.mxu0  ;;  %v3247_v53 = vpop.f32.mrf.mxu2 }
 0x74d   : > { %v3218_v31 = vadd.f32 %v3217_v43, %v3176_v26  ;;  %v3332_v40 = vpop.f32.mrf.mxu1 }
 0x74e   : > { %v3274_v32 = vpop.f32.mrf.mxu3 }
 0x74f   : > { %v3248_v37 = vadd.f32 %v3247_v53, %v3218_v31 }
 0x751   : > { %v3275_v61 = vadd.f32 %v3274_v32, %v3248_v37 }
 0x754   : > { %v3307_v0 = vpop.f32.mrf.mxu0 }
 0x755   : > { %v3308_v55 = vadd.f32 %v3307_v0, %v3275_v61 }
 0x757   : > { %v3333_v52 = vadd.f32 %v3332_v40, %v3308_v55 }
 0x759   : > { %v3335_v9 = vadd.f32 %v3333_v52, %v4694_v20 }
 0x75b   : > { %v3339_v62 = vsub.f32 %v3335_v9, %v3523_v5 }
 0x75d   : > { %v3354_v41 = vmul.f32 %v3352_v18, %v3339_v62 }
 0x75f   : > { %v3358_v20 = vmul.f32 %v3524_v38, %v3354_v41 }
 0x761   : > { %v3362_v11 = vadd.f32 %v3525_v60, %v3358_v20 }
 0x763   : > { %3363 = vst.msk [vmem:[%s809_s5] sm:$0xff] %vm853_vm0, %v3362_v11 }
 0x764   : > { %3590 = shalt.err (!%p3587_p3)
}
 0x765   : > { %3449 = dma.vmem_to_hbm [thread:$0]  (%p3814_p5), %s3378_s9, 128, %s3380_s10, %s3365_s3  }
 0x766 PF: > { %p3455_p4 = scmp.ge.s32.totalorder %s3625_s30, 2  ;;  %s3391_s8 = sand.u32 1, %s3613_s7  }
 0x767   : > { %s3392_s5 = scalar_lea.sflag [#allocation3], %s3391_s8 }
 0x768   : > { %p3452_p7 = pnand %p3455_p4, %p3818_p6 }
 0x76a   : > { %p3453_p8 = pneg %p3452_p7 }
 0x76c   : > { %3608 = dma.done.wait (%p3453_p8), %s3392_s5, 128  }
 0x76d   : > { %3610 = vsyncadd (%p3453_p8), %s3392_s5, 4294967168  ;;  %s5067_s30 = sld [smem:[#allocation6_spill]]  ;;  %s5070_s7 = smov %s3617_s4 }
 0x76e   : > { %s5068_s11 = sld [smem:[#allocation5_spill]] }
 0x76f   : > { %s5069_s8 = sld [smem:[#allocation7_spill]] }
 0x773   : > { %p37_p9 = scmp.ge.s32.totalorder %s5067_s30, 4  }
 0x774   : > { %s5071_s4 = smov %s5068_s11 }
 0x775   :  { %39 = sbr.rel (!%p37_p9) target bundleno = 18 (0x12), region = 163 }
 0x77a   :  { %3398 = vsyncpa [#allocation3], 1 }
 0x77b   :  { %3400 = vsyncpa [#allocation3 + $0x1], 1 }

</bundles_post_ra>
